<compile_context>
chip_gen: v7x
topology: tpu7x:2x2x1
jax: 0.10.0
libtpu: 0.0.40
codegen_flags: <defaults>
</compile_context>

<pallas_src>
import jax
import jax.numpy as jnp
import numpy as np
from jax.experimental import pallas as pl
from jax.experimental.pallas import tpu as pltpu

_LANE = 128
_SUBLANE = 8


def _round_up(v, m):
    return -(-v // m) * m


def attention_kernel(x_ref, w_ref, b_ref, e_ref, g_ref, o_ref):
    # x_ref: (TB, S*F) lane-dense x slab
    # w_ref: (S*F, S)  block-diagonal weight  w_ref[s*F+f, s] = weight[f]
    # b_ref: (1, S)    per-step bias
    # e_ref: (S, S*F)  0/1 "broadcast a[b,s] over that step's F lanes" matrix
    # g_ref: (S*F, F)  0/1 "reduce steps back onto features" matrix
    # o_ref: (TB, F)
    xf = x_ref[...].astype(jnp.float32)   # no-op for f32 inputs (bf16: single f32 copy,
                                          # already accounted for in the VMEM budget)

    # eij[b, s] = sum_f x[b, s, f] * weight[f]  via the block-diagonal matvec,
    # so the flat lane-dense layout never has to be relaid out to (TB, S, F).
    eij = jnp.dot(xf, w_ref[...], preferred_element_type=jnp.float32,
                  precision=jax.lax.Precision.HIGHEST) + b_ref[...]      # (TB, S)

    # tanh bounds eij to [-1, 1], so exp cannot overflow and denom > 0.
    a = jnp.exp(jnp.tanh(eij))                                           # (TB, S)
    denom = jnp.sum(a, axis=-1, keepdims=True)                           # (TB, 1)
    a = a * pl.reciprocal(denom, approx=False) + 1e-10   # eps AFTER normalize (== torch)

    # TODO(synk): optional `mask` argument of forward() is not plumbed through
    # (mask=None path implemented, matching the default call).

    # Broadcast a[b, s] across that step's F lanes, multiply, and reduce the
    # steps back onto features -- both as 0/1 matmuls, everything lane-dense.
    a_exp = jnp.dot(a, e_ref[...], preferred_element_type=jnp.float32,
                    precision=jax.lax.Precision.HIGHEST)                 # (TB, S*F)
    out = jnp.dot(xf * a_exp, g_ref[...], preferred_element_type=jnp.float32,
                  precision=jax.lax.Precision.HIGHEST)                   # (TB, F)
    o_ref[...] = out.astype(o_ref.dtype)


def _vmem_capacity_bytes():
    try:
        return int(pltpu.get_tpu_info().vmem_capacity_bytes)
    except Exception:
        return 64 << 20   # conservative fallback: assume v7x-sized VMEM


def _plan(B, flat_cols, out_cols, itemsize, tb=None):
    """Pick the batch block (padded-footprint-aware) and the scoped-VMEM limit."""
    # Per-batch-row bytes *as laid out in VMEM* (last dim padded to 128 lanes).
    in_row = _round_up(flat_cols, _LANE) * itemsize     # dense x row (1 KiB for S*F=256, f32)
    out_row = _round_up(out_cols, _LANE) * itemsize     # lane-padded output row
    f32_row = _round_up(flat_cols, _LANE) * 4           # slab-sized f32 temporaries
    # 2 double-buffered input buffers + 2 output buffers + ~3 f32 temporaries.
    per_row = 2 * in_row + 2 * out_row + 3 * f32_row

    cap = _vmem_capacity_bytes()
    if tb is None:
        # Leave generous headroom for compiler scratch; never chase blocks past
        # the ~85%-of-roofline plateau (a few MiB of HBM bytes per step).
        budget = max(min(cap - (24 << 20), 40 << 20), 8 << 20)
        tb = min(max(_SUBLANE, budget // per_row), 8192)
        if tb >= B:
            tb = B
        else:
            tb = max(_SUBLANE, (tb // _SUBLANE) * _SUBLANE)
            # v7x megacore: prefer an even number of grid steps so the
            # "parallel" batch axis splits evenly across the two TensorCores
            # (no-op on single-TC v5e/v6e).
            nb = -(-B // tb)
            if nb > 1 and nb % 2 == 1:
                tb2 = _round_up(-(-B // (nb + 1)), _SUBLANE)
                if tb2 >= _SUBLANE and (-(-B // tb2)) % 2 == 0:
                    tb = tb2
    else:
        tb = min(tb, B)
        if tb < B:
            tb = max(_SUBLANE, (tb // _SUBLANE) * _SUBLANE)   # clean sublane tiling

    # Scoped-VMEM limit: what this block plan actually needs (+ constants and
    # slack), clamped below physical capacity minus compiler-internal scratch.
    need = per_row * tb + (4 << 20)
    vmem_limit = int(min(max(need, 32 << 20), cap - (8 << 20)))
    return tb, vmem_limit


def attention_forward(x, weight, bias, *, tb=None):
    """x: (B, S, F), weight: (F, 1), bias: (S,) -> (B, F)."""
    B, S, F = x.shape
    SF = S * F
    itemsize = jnp.dtype(x.dtype).itemsize
    tb, vmem_limit = _plan(B, SF, F, itemsize, tb=tb)
    num_blocks = pl.cdiv(B, tb)

    # Lane-dense view of x (free, contiguous reshape). No jnp.pad: the ragged
    # last block is handled by Pallas; all reductions are per-row so padded
    # garbage rows cannot contaminate valid outputs.
    x_flat = x.reshape(B, SF)

    # Tiny constant matrices that keep the whole computation lane-dense.
    k = jnp.arange(SF)
    seg = k // F        # which step a flat column belongs to
    lane = k % F        # which feature a flat column holds
    step_onehot = (seg[:, None] == jnp.arange(S)[None, :]).astype(jnp.float32)  # (SF, S)
    w_flat = step_onehot * weight.reshape(F)[lane][:, None]                     # (SF, S)
    e_mat = step_onehot.T                                                        # (S, SF)
    g_mat = (lane[:, None] == jnp.arange(F)[None, :]).astype(jnp.float32)        # (SF, F)
    b_row = bias.reshape(1, S)

    cost = pl.CostEstimate(
        flops=2 * B * SF * S + 2 * B * S * SF + 2 * B * SF * F + 4 * B * SF,
        transcendentals=2 * B * S,
        bytes_accessed=B * SF * itemsize + B * F * itemsize,
    )

    return pl.pallas_call(
        attention_kernel,
        out_shape=jax.ShapeDtypeStruct((B, F), x.dtype),
        grid_spec=pltpu.PrefetchScalarGridSpec(
            num_scalar_prefetch=0,
            grid=(num_blocks,),
            in_specs=[
                pl.BlockSpec((tb, SF), lambda i: (i, 0)),   # x slab (ragged last block OK)
                pl.BlockSpec((SF, S), lambda i: (0, 0)),    # block-diagonal weight
                pl.BlockSpec((1, S), lambda i: (0, 0)),     # per-step bias
                pl.BlockSpec((S, SF), lambda i: (0, 0)),    # step-broadcast matrix
                pl.BlockSpec((SF, F), lambda i: (0, 0)),    # step-reduce matrix
            ],
            out_specs=pl.BlockSpec((tb, F), lambda i: (i, 0)),
        ),
        compiler_params=pltpu.CompilerParams(
            dimension_semantics=("parallel",),
            vmem_limit_bytes=vmem_limit,
        ),
        cost_estimate=cost,
    )(x_flat, w_flat, b_row, e_mat, g_mat)


def reference_forward_np(x, weight, bias):
    """float64 numpy ground truth for the PyTorch forward (mask=None)."""
    x = np.asarray(x, np.float64)
    w = np.asarray(weight, np.float64).reshape(-1)
    b = np.asarray(bias, np.float64)
    eij = np.tanh(x @ w + b)                       # (B, S)
    a = np.exp(eij)
    a = a / np.sum(a, axis=1, keepdims=True) + 1e-10
    return np.sum(x * a[:, :, None], axis=1)       # (B, F)


if __name__ == "__main__":
    step_dim = 8       # sequence length
    feature_dim = 32   # hidden size

    key = jax.random.PRNGKey(0)
    kx, kw, kb, kx2 = jax.random.split(key, 4)

    # xavier_uniform-style weight (F, 1); nonzero bias to exercise the add path
    # (the module initializes b to zeros, but the forward is identical).
    bound = float(np.sqrt(6.0 / (feature_dim + 1)))
    weight = jax.random.uniform(kw, (feature_dim, 1), jnp.float32,
                                minval=-bound, maxval=bound)
    bias = 0.1 * jax.random.normal(kb, (step_dim,), jnp.float32)

    # Small case (single block, block == full batch).
    batch = 2
    x = jax.random.normal(kx, (batch, step_dim, feature_dim), jnp.float32)
    out = jax.block_until_ready(attention_forward(x, weight, bias))
    ref = reference_forward_np(x, weight, bias)
    assert out.shape == (batch, feature_dim)
    np.testing.assert_allclose(np.asarray(out), ref, rtol=2e-5, atol=2e-5)

    # Multi-block + ragged last block (B=20, tb=8 -> 3 grid steps, no jnp.pad).
    batch2 = 20
    x2 = jax.random.normal(kx2, (batch2, step_dim, feature_dim), jnp.float32)
    out2 = jax.block_until_ready(attention_forward(x2, weight, bias, tb=8))
    ref2 = reference_forward_np(x2, weight, bias)
    assert out2.shape == (batch2, feature_dim)
    np.testing.assert_allclose(np.asarray(out2), ref2, rtol=2e-5, atol=2e-5)

    # Auto-planned tile on the same inputs (exercises the VMEM planner path).
    out3 = jax.block_until_ready(attention_forward(x2, weight, bias))
    np.testing.assert_allclose(np.asarray(out3), ref2, rtol=2e-5, atol=2e-5)

    print("KERNEL_OK")
</pallas_src>

<mosaic_0001>
module attributes {stable_mosaic.version = 11 : i64} {
  func.func @attention_kernel(%arg0: i32, %arg1: memref<2x256xf32, #tpu.memory_space<vmem>>, %arg2: memref<256x8xf32, #tpu.memory_space<vmem>>, %arg3: memref<1x8xf32, #tpu.memory_space<vmem>>, %arg4: memref<8x256xf32, #tpu.memory_space<vmem>>, %arg5: memref<256x32xf32, #tpu.memory_space<vmem>>, %arg6: memref<2x32xf32, #tpu.memory_space<vmem>>) attributes {dimension_semantics = [#tpu.dimension_semantics<parallel>], iteration_bounds = array<i64: 1>, scalar_prefetch = 0 : i64, scratch_operands = 0 : i64, tpu.core_type = #tpu.core_type<tc>, window_params = [{transform_indices = @transform_0, window_bounds = array<i64: 2, 256>}, {pipeline_mode = #tpu.pipeline_mode<synchronous>, transform_indices = @transform_1, window_bounds = array<i64: 256, 8>}, {pipeline_mode = #tpu.pipeline_mode<synchronous>, transform_indices = @transform_2, window_bounds = array<i64: 1, 8>}, {pipeline_mode = #tpu.pipeline_mode<synchronous>, transform_indices = @transform_3, window_bounds = array<i64: 8, 256>}, {pipeline_mode = #tpu.pipeline_mode<synchronous>, transform_indices = @transform_4, window_bounds = array<i64: 256, 32>}, {transform_indices = @transform_5, window_bounds = array<i64: 2, 32>}]} {
    %c0 = arith.constant 0 : index
    %c0_0 = arith.constant 0 : index
    %0 = vector.load %arg1[%c0, %c0_0] : memref<2x256xf32, #tpu.memory_space<vmem>>, vector<2x256xf32>
    %c0_1 = arith.constant 0 : index
    %c0_2 = arith.constant 0 : index
    %1 = vector.load %arg2[%c0_1, %c0_2] : memref<256x8xf32, #tpu.memory_space<vmem>>, vector<256x8xf32>
    %cst = arith.constant dense<0.000000e+00> : vector<2x8xf32>
    %2 = tpu.matmul %0, %1, %cst {dimension_numbers = #tpu.dot_dimension_numbers<[1], [0], [0], [1], [0, 0, 1, 1], [], []>, precision = #tpu.contract_precision<fp32>} : vector<2x256xf32>, vector<256x8xf32>, vector<2x8xf32> -> vector<2x8xf32>
    %c0_3 = arith.constant 0 : index
    %c0_4 = arith.constant 0 : index
    %3 = vector.load %arg3[%c0_3, %c0_4] : memref<1x8xf32, #tpu.memory_space<vmem>>, vector<1x8xf32>
    %4 = vector.broadcast %3 : vector<1x8xf32> to vector<2x8xf32>
    %5 = arith.addf %2, %4 : vector<2x8xf32>
    %6 = math.tanh %5 : vector<2x8xf32>
    %7 = math.exp %6 : vector<2x8xf32>
    %cst_5 = arith.constant dense<0.000000e+00> : vector<2xf32>
    %8 = vector.multi_reduction <add>, %7, %cst_5 [1] : vector<2x8xf32> to vector<2xf32>
    %9 = vector.shape_cast %8 : vector<2xf32> to vector<2x1xf32>
    %10 = tpu.reciprocal %9 : vector<2x1xf32> -> vector<2x1xf32>
    %11 = vector.broadcast %10 : vector<2x1xf32> to vector<2x8xf32>
    %12 = arith.mulf %7, %11 : vector<2x8xf32>
    %cst_6 = arith.constant 1.000000e-10 : f32
    %13 = vector.broadcast %cst_6 : f32 to vector<2x8xf32>
    %14 = arith.addf %12, %13 : vector<2x8xf32>
    %c0_7 = arith.constant 0 : index
    %c0_8 = arith.constant 0 : index
    %15 = vector.load %arg4[%c0_7, %c0_8] : memref<8x256xf32, #tpu.memory_space<vmem>>, vector<8x256xf32>
    %cst_9 = arith.constant dense<0.000000e+00> : vector<2x256xf32>
    %16 = tpu.matmul %14, %15, %cst_9 {dimension_numbers = #tpu.dot_dimension_numbers<[1], [0], [0], [1], [0, 0, 1, 1], [], []>, precision = #tpu.contract_precision<fp32>} : vector<2x8xf32>, vector<8x256xf32>, vector<2x256xf32> -> vector<2x256xf32>
    %17 = arith.mulf %0, %16 : vector<2x256xf32>
    %c0_10 = arith.constant 0 : index
    %c0_11 = arith.constant 0 : index
    %18 = vector.load %arg5[%c0_10, %c0_11] : memref<256x32xf32, #tpu.memory_space<vmem>>, vector<256x32xf32>
    %cst_12 = arith.constant dense<0.000000e+00> : vector<2x32xf32>
    %19 = tpu.matmul %17, %18, %cst_12 {dimension_numbers = #tpu.dot_dimension_numbers<[1], [0], [0], [1], [0, 0, 1, 1], [], []>, precision = #tpu.contract_precision<fp32>} : vector<2x256xf32>, vector<256x32xf32>, vector<2x32xf32> -> vector<2x32xf32>
    %c0_13 = arith.constant 0 : index
    %c0_14 = arith.constant 0 : index
    %20 = vector.load %arg6[%c0_13, %c0_14] : memref<2x32xf32, #tpu.memory_space<vmem>>, vector<2x32xf32>
    tpu.vector_store %arg6[%c0_13, %c0_14], %19 {strides = array<i32>} : memref<2x32xf32, #tpu.memory_space<vmem>>, vector<2x32xf32>,
    return
  }
  func.func @transform_0(%arg0: i32) -> (i32, i32) {
    %c0_i32 = arith.constant 0 : i32
    %c0_i32_0 = arith.constant 0 : i32
    return %arg0, %c0_i32 : i32, i32
  }
  func.func @transform_1(%arg0: i32) -> (i32, i32) {
    %c0_i32 = arith.constant 0 : i32
    %c0_i32_0 = arith.constant 0 : i32
    %c0_i32_1 = arith.constant 0 : i32
    return %c0_i32, %c0_i32_0 : i32, i32
  }
  func.func @transform_2(%arg0: i32) -> (i32, i32) {
    %c0_i32 = arith.constant 0 : i32
    %c0_i32_0 = arith.constant 0 : i32
    %c0_i32_1 = arith.constant 0 : i32
    return %c0_i32, %c0_i32_0 : i32, i32
  }
  func.func @transform_3(%arg0: i32) -> (i32, i32) {
    %c0_i32 = arith.constant 0 : i32
    %c0_i32_0 = arith.constant 0 : i32
    %c0_i32_1 = arith.constant 0 : i32
    return %c0_i32, %c0_i32_0 : i32, i32
  }
  func.func @transform_4(%arg0: i32) -> (i32, i32) {
    %c0_i32 = arith.constant 0 : i32
    %c0_i32_0 = arith.constant 0 : i32
    %c0_i32_1 = arith.constant 0 : i32
    return %c0_i32, %c0_i32_0 : i32, i32
  }
  func.func @transform_5(%arg0: i32) -> (i32, i32) {
    %c0_i32 = arith.constant 0 : i32
    %c0_i32_0 = arith.constant 0 : i32
    return %arg0, %c0_i32 : i32, i32
  }
}

</mosaic_0001>

<bundles_post_ra>
// kernel: tpu_custom_call.1
= control target key start
LH: loop header
LB: loop body
LE: loop exit
PB: predicated region body
PF: predicated region fallthrough
CT: control target
= control target key end

     0   :  { %v3198_v26 = vmov 1983009808   ;;  %s4489_s0 = inlined_call_operand.vmem [shape: f32[2,256], index: 0, kind: input, shape index: {}]   ;;  %s4490_s1 = inlined_call_operand.vmem [shape: f32[256,8], index: 1, kind: input, shape index: {}]   ;;  %s4491_s2 = inlined_call_operand.vmem [shape: f32[1,8], index: 2, kind: input, shape index: {}]   ;;  %s4492_s3 = inlined_call_operand.vmem [shape: f32[8,256], index: 3, kind: input, shape index: {}]   ;;  %s4493_s4 = inlined_call_operand.vmem [shape: f32[256,32], index: 4, kind: input, shape index: {}]   ;;  %s4494_s5 = inlined_call_operand.hbm [shape: f32[2,32], index: 5, kind: output, shape index: {}]  }
   0x1   :  { %v38_v0 = vld [vmem:[%s4490_s1 + $0x80] sm:$0xff]  ;;  %v39_v1 = vld [vmem:[%s4490_s1 + $0x88] sm:$0xff]  ;;  %v40_v7 = vld [vmem:[%s4490_s1 + $0x90] sm:$0xff]  ;;  %v3277_v27 = vunpack.c.l.s4 %v3198_v26 }
   0x2   :  { %v22_v2 = vld [vmem:[%s4490_s1] sm:$0xff]  ;;  %v121_v3 = vand.u32 4294901760, %v38_v0  ;;  %v124_v4 = vand.u32 4294901760, %v39_v1  ;;  %v23_v5 = vld [vmem:[%s4490_s1 + $0x8] sm:$0xff]  ;;  %v41_v8 = vld [vmem:[%s4490_s1 + $0x98] sm:$0xff]  ;;  %v127_v10 = vand.u32 4294901760, %v40_v7 }
   0x3   :  { %v73_v6 = vand.u32 4294901760, %v22_v2  ;;  %v76_v9 = vand.u32 4294901760, %v23_v5  ;;  %v130_v11 = vand.u32 4294901760, %v41_v8  ;;  %v24_v12 = vld [vmem:[%s4490_s1 + $0x10] sm:$0xff]  ;;  %v25_v13 = vld [vmem:[%s4490_s1 + $0x18] sm:$0xff]  ;;  %v42_v19 = vld [vmem:[%s4490_s1 + $0xa0] sm:$0xff] }
   0x4   :  { %v3255_v15 = vpack.c.bf16 %v124_v4, %v121_v3  ;;  %v79_v17 = vand.u32 4294901760, %v24_v12  ;;  %v82_v18 = vand.u32 4294901760, %v25_v13  ;;  %v43_v20 = vld [vmem:[%s4490_s1 + $0xa8] sm:$0xff]  ;;  %v26_v24 = vld [vmem:[%s4490_s1 + $0x20] sm:$0xff]  ;;  %v3280_v28 = vsub.f32 %v40_v7, %v127_v10  ;;  %v44_v40 = vld [vmem:[%s4490_s1 + $0xb0] sm:$0xff] }
   0x5   :  { %v3257_v16 = vsub.f32 %v22_v2, %v73_v6  ;;  %v3265_v21 = vpack.c.bf16 %v76_v9, %v73_v6  ;;  %v3267_v22 = vsub.f32 %v23_v5, %v76_v9  ;;  %v3269_v23 = vpack.c.bf16 %v130_v11, %v127_v10  ;;  %v27_v25 = vld [vmem:[%s4490_s1 + $0x28] sm:$0xff]  ;;  %v45_v45 = vld [vmem:[%s4490_s1 + $0xb8] sm:$0xff]  ;;  %v28_v58 = vld [vmem:[%s4490_s1 + $0x30] sm:$0xff] }
   0x6   :  { %2770 = vmatprep.subr.bf16.mxu0 %v3255_v15  ;;  %v3282_v29 = vsub.f32 %v41_v8, %v130_v11  ;;  %v3284_v30 = vpack.c.bf16 %v82_v18, %v79_v17  ;;  %v3286_v31 = vsub.f32 %v24_v12, %v79_v17  ;;  %v133_v32 = vand.u32 4294901760, %v42_v19  ;;  %v29_v59 = vld [vmem:[%s4490_s1 + $0x38] sm:$0xff] }
   0x7   :  { %2772 = vmatpush3.bf16.msra.mxu0 %v3265_v21  ;;  %v136_v33 = vand.u32 4294901760, %v43_v20  ;;  %v3289_v34 = vsub.f32 %v38_v0, %v121_v3  ;;  %v3291_v35 = vsub.f32 %v39_v1, %v124_v4  ;;  %v85_v36 = vand.u32 4294901760, %v26_v24 }
   0x8   :  { %2774 = vmatprep.subr.bf16.mxu0 %v3269_v23  ;;  %v88_v37 = vand.u32 4294901760, %v27_v25  ;;  %v4510_v38 = vand.u32 4294901760, %v3257_v16  ;;  %v4509_v39 = vand.u32 4294901760, %v3267_v22  ;;  %v3299_v41 = vsub.f32 %v25_v13, %v82_v18 }
   0x9   :  { %v3301_v42 = vpack.c.bf16 %v136_v33, %v133_v32  ;;  %v3303_v43 = vsub.f32 %v42_v19, %v133_v32  ;;  %v4513_v44 = vand.u32 4294901760, %v3289_v34  ;;  %v3309_v46 = vsub.f32 %v43_v20, %v136_v33 }
   0xa   :  { %v4512_v47 = vand.u32 4294901760, %v3291_v35  ;;  %v3312_v48 = vpack.c.bf16 %v88_v37, %v85_v36  ;;  %v3314_v49 = vsub.f32 %v26_v24, %v85_v36  ;;  %v188_v51 = vsub.f32 %v3257_v16, %v4510_v38 }
   0xb   :  { %2776 = vmatpush3.bf16.msra.mxu0 %v3284_v30  ;;  %v300_v50 = vsub.f32 %v3289_v34, %v4513_v44  ;;  %v195_v52 = vsub.f32 %v3267_v22, %v4509_v39  ;;  %v139_v53 = vand.u32 4294901760, %v44_v40  ;;  %v142_v55 = vand.u32 4294901760, %v45_v45 }
   0xc   :  { %2778 = vmatprep.subr.bf16.mxu0 %v3301_v42  ;;  %v307_v54 = vsub.f32 %v3291_v35, %v4512_v47  ;;  %v4508_v56 = vand.u32 4294901760, %v3280_v28  ;;  %v4505_v57 = vand.u32 4294901760, %v3282_v29  ;;  %v3338_v61 = vsub.f32 %v27_v25, %v88_v37 }
   0xd   :  { %v301_v60 = vand.u32 4294901760, %v300_v50  ;;  %v189_v62 = vand.u32 4294901760, %v188_v51  ;;  %v196_v63 = vand.u32 4294901760, %v195_v52 }
   0xe   :  { %10 = vsyncpa [#allocation3], 0  ;;  %v308_v0 = vand.u32 4294901760, %v307_v54  ;;  %v3340_v1 = vpack.c.bf16 %v142_v55, %v139_v53  ;;  %v3342_v2 = vsub.f32 %v44_v40, %v139_v53  ;;  %v314_v3 = vsub.f32 %v3280_v28, %v4508_v56  ;;  %v46_v8 = vld [vmem:[%s4490_s1 + $0xc0] sm:$0xff]  ;;  %v47_v9 = vld [vmem:[%s4490_s1 + $0xc8] sm:$0xff] }
   0xf   :  { %2780 = vmatpush3.bf16.msra.mxu0 %v3312_v48  ;;  %v2803_v4 = vpack.c.bf16 %v196_v63, %v189_v62  ;;  %v321_v5 = vsub.f32 %v3282_v29, %v4505_v57  ;;  %v91_v6 = vand.u32 4294901760, %v28_v58  ;;  %v94_v7 = vand.u32 4294901760, %v29_v59  ;;  %v30_v17 = vld [vmem:[%s4490_s1 + $0x40] sm:$0xff]  ;;  %v31_v36 = vld [vmem:[%s4490_s1 + $0x48] sm:$0xff]  ;;  %v49_v63 = vld [vmem:[%s4490_s1 + $0xd8] sm:$0xff] }
  0x10   :  { %v2801_v10 = vpack.c.bf16 %v308_v0, %v301_v60  ;;  %2782 = vmatprep.subr.bf16.mxu0 %v3340_v1  ;;  %v315_v11 = vand.u32 4294901760, %v314_v3  ;;  %v4503_v12 = vand.u32 4294901760, %v3286_v31  ;;  %v4502_v13 = vand.u32 4294901760, %v3299_v41 }
  0x11   :  { %v3363_v18 = vsub.f32 %v45_v45, %v142_v55  ;;  %v322_v19 = vand.u32 4294901760, %v321_v5  ;;  %v3365_v20 = vpack.c.bf16 %v94_v7, %v91_v6  ;;  %v3367_v24 = vsub.f32 %v28_v58, %v91_v6  ;;  %v32_v6 = vld [vmem:[%s4490_s1 + $0x50] sm:$0xff] }
  0x12   :  { %2802 = vmatprep.subr.bf16.mxu1 %v2801_v10  ;;  %v202_v25 = vsub.f32 %v3286_v31, %v4503_v12  ;;  %v209_v26 = vsub.f32 %v3299_v41, %v4502_v13  ;;  %v145_v32 = vand.u32 4294901760, %v46_v8  ;;  %v148_v33 = vand.u32 4294901760, %v47_v9 }
  0x13   :  { %2804 = vmatpush3.bf16.msra.mxu1 %v2803_v4  ;;  %v2805_v37 = vpack.c.bf16 %v322_v19, %v315_v11  ;;  %2784 = vmatpush3.bf16.msra.mxu0 %v3365_v20  ;;  %v4500_v40 = vand.u32 4294901760, %v3303_v43  ;;  %v4499_v45 = vand.u32 4294901760, %v3309_v46  ;;  %v97_v50 = vand.u32 4294901760, %v30_v17 }
  0x14   :  { %v3381_v51 = vsub.f32 %v29_v59, %v94_v7  ;;  %v203_v52 = vand.u32 4294901760, %v202_v25  ;;  %v210_v53 = vand.u32 4294901760, %v209_v26  ;;  %v3383_v54 = vpack.c.bf16 %v148_v33, %v145_v32  ;;  %v48_v59 = vld [vmem:[%s4490_s1 + $0xd0] sm:$0xff] }
  0x15   :  { %2806 = vmatprep.subr.bf16.mxu1 %v2805_v37  ;;  %v3385_v55 = vsub.f32 %v46_v8, %v145_v32  ;;  %v328_v58 = vsub.f32 %v3303_v43, %v4500_v40  ;;  %v335_v60 = vsub.f32 %v3309_v46, %v4499_v45  ;;  %v100_v62 = vand.u32 4294901760, %v31_v36  ;;  %v33_v32 = vld [vmem:[%s4490_s1 + $0x58] sm:$0xff] }
  0x16   :  { %v2807_v0 = vpack.c.bf16 %v210_v53, %v203_v52  ;;  %2786 = vmatprep.subr.bf16.mxu0 %v3383_v54  ;;  %v3400_v3 = vsub.f32 %v47_v9, %v148_v33  ;;  %v4498_v4 = vand.u32 4294901760, %v3314_v49  ;;  %v4495_v5 = vand.u32 4294901760, %v3338_v61 }
  0x17   :  { %v329_v7 = vand.u32 4294901760, %v328_v58  ;;  %v336_v8 = vand.u32 4294901760, %v335_v60  ;;  %v3407_v10 = vpack.c.bf16 %v100_v62, %v97_v50  ;;  %v3409_v11 = vsub.f32 %v30_v17, %v97_v50 }
  0x18   :  { %2808 = vmatpush3.bf16.msra.mxu1 %v2807_v0  ;;  %v216_v9 = vsub.f32 %v3314_v49, %v4498_v4  ;;  %v223_v19 = vsub.f32 %v3338_v61, %v4495_v5  ;;  %v151_v25 = vand.u32 4294901760, %v48_v59  ;;  %v154_v26 = vand.u32 4294901760, %v49_v63 }
  0x19   :  { %v2809_v33 = vpack.c.bf16 %v336_v8, %v329_v7  ;;  %2788 = vmatpush3.bf16.msra.mxu0 %v3407_v10  ;;  %v4497_v17 = vand.u32 4294901760, %v3342_v2  ;;  %v4496_v37 = vand.u32 4294901760, %v3363_v18  ;;  %v103_v50 = vand.u32 4294901760, %v32_v6 }
  0x1a   :  { %v3423_v52 = vsub.f32 %v31_v36, %v100_v62  ;;  %v217_v53 = vand.u32 4294901760, %v216_v9  ;;  %v224_v58 = vand.u32 4294901760, %v223_v19  ;;  %v3425_v60 = vpack.c.bf16 %v154_v26, %v151_v25  ;;  %v50_v36 = vld [vmem:[%s4490_s1 + $0xe0] sm:$0xff]  ;;  %v51_v62 = vld [vmem:[%s4490_s1 + $0xe8] sm:$0xff] }
  0x1b   :  { %2810 = vmatprep.subr.bf16.mxu1 %v2809_v33  ;;  %v3427_v0 = vsub.f32 %v48_v59, %v151_v25  ;;  %v342_v7 = vsub.f32 %v3342_v2, %v4497_v17  ;;  %v349_v8 = vsub.f32 %v3363_v18, %v4496_v37  ;;  %v106_v5 = vand.u32 4294901760, %v33_v32  ;;  %v34_v33 = vld [vmem:[%s4490_s1 + $0x60] sm:$0xff] }
  0x1c   :  { %v2811_v9 = vpack.c.bf16 %v224_v58, %v217_v53  ;;  %2790 = vmatprep.subr.bf16.mxu0 %v3425_v60  ;;  %v3442_v59 = vsub.f32 %v49_v63, %v154_v26  ;;  %v4501_v19 = vand.u32 4294901760, %v3367_v24  ;;  %v4504_v25 = vand.u32 4294901760, %v3381_v51 }
  0x1d   :  { %v343_v37 = vand.u32 4294901760, %v342_v7  ;;  %v350_v17 = vand.u32 4294901760, %v349_v8  ;;  %v3449_v4 = vpack.c.bf16 %v106_v5, %v103_v50  ;;  %v3451_v45 = vsub.f32 %v32_v6, %v103_v50  ;;  %v35_v7 = vld [vmem:[%s4490_s1 + $0x68] sm:$0xff] }
  0x1e   :  { %2812 = vmatpush3.bf16.msra.mxu1 %v2811_v9  ;;  %v230_v63 = vsub.f32 %v3367_v24, %v4501_v19  ;;  %v237_v26 = vsub.f32 %v3381_v51, %v4504_v25  ;;  %v157_v53 = vand.u32 4294901760, %v50_v36  ;;  %v160_v58 = vand.u32 4294901760, %v51_v62 }
  0x1f   :  { %4588 = vst [vmem:[#allocation5_spill] sm:$0xff] %v3449_v4  ;;  %v2813_v8 = vpack.c.bf16 %v350_v17, %v343_v37  ;;  %2792 = vmatpush3.bf16.msra.mxu0 %v3449_v4  ;;  %v4507_v6 = vand.u32 4294901760, %v3385_v55  ;;  %v4506_v50 = vand.u32 4294901760, %v3400_v3  ;;  %v109_v9 = vand.u32 4294901760, %v34_v33 }
  0x20   :  { %v3465_v40 = vsub.f32 %v33_v32, %v106_v5  ;;  %v231_v19 = vand.u32 4294901760, %v230_v63  ;;  %v238_v13 = vand.u32 4294901760, %v237_v26  ;;  %v3467_v12 = vpack.c.bf16 %v160_v58, %v157_v53  ;;  %v52_v5 = vld [vmem:[%s4490_s1 + $0xf0] sm:$0xff]  ;;  %v53_v32 = vld [vmem:[%s4490_s1 + $0xf8] sm:$0xff] }
  0x21   :  { %2814 = vmatprep.subr.bf16.mxu1 %v2813_v8  ;;  %v3469_v25 = vsub.f32 %v50_v36, %v157_v53  ;;  %v356_v17 = vsub.f32 %v3385_v55, %v4507_v6  ;;  %v363_v37 = vsub.f32 %v3400_v3, %v4506_v50  ;;  %v112_v57 = vand.u32 4294901760, %v35_v7  ;;  %v36_v8 = vld [vmem:[%s4490_s1 + $0x70] sm:$0xff] }
  0x22   :  { %4589 = vst [vmem:[#allocation6_spill] sm:$0xff] %v3467_v12  ;;  %v2815_v63 = vpack.c.bf16 %v238_v13, %v231_v19  ;;  %2794 = vmatprep.subr.bf16.mxu0 %v3467_v12  ;;  %v3484_v36 = vsub.f32 %v51_v62, %v160_v58  ;;  %v4511_v26 = vand.u32 4294901760, %v3409_v11  ;;  %v4514_v53 = vand.u32 4294901760, %v3423_v52 }
  0x23   :  { %v357_v50 = vand.u32 4294901760, %v356_v17  ;;  %v364_v6 = vand.u32 4294901760, %v363_v37  ;;  %v3491_v56 = vpack.c.bf16 %v112_v57, %v109_v9  ;;  %v3493_v39 = vsub.f32 %v34_v33, %v109_v9  ;;  %v37_v17 = vld [vmem:[%s4490_s1 + $0x78] sm:$0xff] }
  0x24   :  { %2816 = vmatpush3.bf16.msra.mxu1 %v2815_v63  ;;  %v244_v13 = vsub.f32 %v3409_v11, %v4511_v26  ;;  %v251_v62 = vsub.f32 %v3423_v52, %v4514_v53  ;;  %v163_v19 = vand.u32 4294901760, %v52_v5  ;;  %v166_v58 = vand.u32 4294901760, %v53_v32 }
  0x25   :  { %4590 = vst [vmem:[#allocation7_spill] sm:$0xff] %v3491_v56  ;;  %v2817_v37 = vpack.c.bf16 %v364_v6, %v357_v50  ;;  %2796 = vmatpush3.bf16.msra.mxu0 %v3491_v56  ;;  %v4518_v33 = vand.u32 4294901760, %v3427_v0  ;;  %v4517_v9 = vand.u32 4294901760, %v3442_v59  ;;  %v115_v63 = vand.u32 4294901760, %v36_v8 }
  0x26   :  { %v3507_v38 = vsub.f32 %v35_v7, %v112_v57  ;;  %v245_v26 = vand.u32 4294901760, %v244_v13  ;;  %v252_v47 = vand.u32 4294901760, %v251_v62  ;;  %v3509_v44 = vpack.c.bf16 %v166_v58, %v163_v19 }
  0x27   :  { %2818 = vmatprep.subr.bf16.mxu1 %v2817_v37  ;;  %v3511_v53 = vsub.f32 %v52_v5, %v163_v19  ;;  %v370_v6 = vsub.f32 %v3427_v0, %v4518_v33  ;;  %v377_v50 = vsub.f32 %v3442_v59, %v4517_v9  ;;  %v118_v14 = vand.u32 4294901760, %v37_v17 }
  0x28   :  { %4591 = vst [vmem:[#allocation8_spill] sm:$0xff] %v3507_v38  ;;  %4592 = vst [vmem:[#allocation9_spill] sm:$0xff] %v3509_v44  ;;  %v2819_v56 = vpack.c.bf16 %v252_v47, %v245_v26  ;;  %2798 = vmatprep.subr.bf16.mxu0 %v3509_v44  ;;  %v3520_v57 = vsub.f32 %v53_v32, %v166_v58  ;;  %v4520_v7 = vand.u32 4294901760, %v3451_v45  ;;  %v4519_v13 = vand.u32 4294901760, %v3465_v40 }
  0x29   :  { %v371_v5 = vand.u32 4294901760, %v370_v6  ;;  %v378_v62 = vand.u32 4294901760, %v377_v50  ;;  %v3524_v19 = vpack.c.bf16 %v118_v14, %v115_v63  ;;  %v3526_v37 = vsub.f32 %v36_v8, %v115_v63  ;;  %v3173_v8 = vld.sshfl [vmem:[%s4489_s0] sm:$0x33 pattern:$0x76325410] }
  0x2a   :  { %4593 = vst [vmem:[#allocation10_spill] sm:$0xff] %v3520_v57  ;;  %2820 = vmatpush3.bf16.msra.mxu1 %v2819_v56  ;;  %v258_v9 = vsub.f32 %v3451_v45, %v4520_v7  ;;  %v265_v47 = vsub.f32 %v3465_v40, %v4519_v13  ;;  %v64_v32 = vunpack.c.0.s8 %v3277_v27  ;;  %v4596_v26 = vlaneseq }
  0x2b   :  { %4594 = vst [vmem:[#allocation11_spill] sm:$0xff] %v3524_v19  ;;  %4595 = vst [vmem:[#allocation12_spill] sm:$0xff] %v3526_v37  ;;  %v2821_v33 = vpack.c.bf16 %v378_v62, %v371_v5  ;;  %2800 = vmatpush3.bf16.msra.mxu0 %v3524_v19  ;;  %v4523_v56 = vand.u32 4294901760, %v3469_v25  ;;  %v4525_v63 = vand.u32 4294901760, %v3484_v36  ;;  %v2833_v6 = vpack.c.bf16 %v3291_v35, %v3289_v34 }
  0x2c   :  { %v66_v58 = vshrl.u32 %v4596_v26, 7  ;;  %v259_v50 = vand.u32 4294901760, %v258_v9  ;;  %v266_v13 = vand.u32 4294901760, %v265_v47  ;;  %v4528_v27 = vand.u32 4294901760, %v3493_v39 }
  0x2d   :  { %2822 = vmatprep.subr.bf16.mxu1 %v2821_v33  ;;  %v3547_v5 = vsub.f32 %v37_v17, %v118_v14  ;;  %v384_v62 = vsub.f32 %v3469_v25, %v4523_v56  ;;  %v391_v26 = vsub.f32 %v3484_v36, %v4525_v63  ;;  %2834 = vmatprep.subr.bf16.mxu0 %v2833_v6  ;;  %v278_v19 = vand.u32 4294901760, %v3507_v38 }
  0x2e   :  { %v3544_v7 = vsub.s32 %v64_v32, %v66_v58  ;;  %v2823_v9 = vpack.c.bf16 %v266_v13, %v259_v50  ;;  %v272_v47 = vsub.f32 %v3493_v39, %v4528_v27  ;;  %v397_v33 = vand.u32 4294901760, %v3511_v53 }
  0x2f   :  { %4598 = vst [vmem:[#allocation14_spill] sm:$0xff] %v3547_v5  ;;  %v385_v14 = vand.u32 4294901760, %v384_v62  ;;  %v392_v17 = vand.u32 4294901760, %v391_v26  ;;  %v279_v32 = vsub.f32 %v3507_v38, %v278_v19  ;;  %v404_v58 = vand.u32 4294901760, %v3520_v57 }
  0x30   :  { %4597 = vst [vmem:[#allocation13_spill] sm:$0xff] %v3544_v7  ;;  %2824 = vmatpush3.bf16.msra.mxu1 %v2823_v9  ;;  %v69_v56 = vcombine.high %v3173_v8, %v3173_v8  ;;  %v3562_v7 = vand.u32 4294901760, %v3173_v8  ;;  %v273_v6 = vand.u32 4294901760, %v272_v47  ;;  %v398_v63 = vsub.f32 %v3511_v53, %v397_v33 }
  0x31   :  { %v2825_v13 = vpack.c.bf16 %v392_v17, %v385_v14  ;;  %v280_v50 = vand.u32 4294901760, %v279_v32  ;;  %v405_v44 = vsub.f32 %v3520_v57, %v404_v58  ;;  %v285_v12 = vand.u32 4294901760, %v3526_v37 }
  0x32   :  { %v3566_v27 = vand.u32 4294901760, %v69_v56  ;;  %v3569_v62 = vsub.f32 %v3173_v8, %v3562_v7  ;;  %v399_v26 = vand.u32 4294901760, %v398_v63  ;;  %v292_v38 = vand.u32 4294901760, %v3547_v5 }
  0x33   :  { %2826 = vmatprep.subr.bf16.mxu1 %v2825_v13  ;;  %v2827_v9 = vpack.c.bf16 %v280_v50, %v273_v6  ;;  %v406_v4 = vand.u32 4294901760, %v405_v44  ;;  %v286_v17 = vsub.f32 %v3526_v37, %v285_v12  ;;  %v2835_v57 = vpack.c.bf16 %v3267_v22, %v3257_v16 }
  0x34   :  { %4599 = vst [vmem:[#allocation15_spill] sm:$0xff] %v3566_v27  ;;  %4600 = vst [vmem:[#allocation16_spill] sm:$0xff] %v3569_v62  ;;  %v169_v47 = vsub.f32 %v69_v56, %v3566_v27  ;;  %v4539_v14 = vand.u32 4294901760, %v3569_v62  ;;  %409 = vmatprep.mubr.f32.mxu1 %v3566_v27  ;;  %v293_v8 = vsub.f32 %v3547_v5, %v292_v38  ;;  %v4602_v5 = vand.u32 4294901760, %v3291_v35 }
  0x35   :  { %2828 = vmatpush3.bf16.msra.mxu1 %v2827_v9  ;;  %v2829_v32 = vpack.c.bf16 %v406_v4, %v399_v26  ;;  %v287_v44 = vand.u32 4294901760, %v286_v17  ;;  %v2837_v27 = vpack.c.bf16 %v3282_v29, %v3280_v28  ;;  %v4601_v26 = vand.u32 4294901760, %v3289_v34 }
  0x36   :  { %v170_v63 = vand.u32 4294901760, %v169_v47  ;;  %v177_v6 = vsub.f32 %v3569_v62, %v4539_v14  ;;  %v294_v13 = vand.u32 4294901760, %v293_v8  ;;  %v4603_v17 = vand.u32 4294901760, %v3257_v16 }
  0x37   :  { %2830 = vmatprep.subr.bf16.mxu1 %v2829_v32  ;;  %v3589_v37 = vpack.c.bf16 %v4602_v5, %v4601_v26  ;;  %v4604_v32 = vand.u32 4294901760, %v3267_v22  ;;  %v4606_v14 = vand.u32 4294901760, %v3282_v29  ;;  %v4608_v34 = vand.u32 4294901760, %v3299_v41 }
  0x38   :  { %v171_v50 = vsub.f32 %v169_v47, %v170_v63  ;;  %v178_v56 = vand.u32 4294901760, %v177_v6  ;;  %v2831_v9 = vpack.c.bf16 %v294_v13, %v287_v44  ;;  %v4605_v6 = vand.u32 4294901760, %v3280_v28 }
  0x39   :  { %v3595_v8 = vpack.c.bf16 %v4604_v32, %v4603_v17  ;;  %v4607_v44 = vand.u32 4294901760, %v3286_v31  ;;  %v4609_v5 = vand.u32 4294901760, %v3303_v43  ;;  %v4610_v16 = vand.u32 4294901760, %v3309_v46 }
  0x3a   :  { %v172_v4 = vand.u32 4294901760, %v171_v50  ;;  %v3601_v62 = vpack.c.bf16 %v4606_v14, %v4605_v6  ;;  %2832 = vmatpush3.bf16.msra.mxu1 %v2831_v9  ;;  %v4611_v13 = vand.u32 4294901760, %v3314_v49  ;;  %v4612_v28 = vand.u32 4294901760, %v3338_v61 }
  0x3b   :  { %v3607_v35 = vpack.c.bf16 %v4608_v34, %v4607_v44  ;;  %v3613_v22 = vpack.c.bf16 %v4610_v16, %v4609_v5  ;;  %v4613_v14 = vand.u32 4294901760, %v3342_v2  ;;  %v4614_v50 = vand.u32 4294901760, %v3363_v18  ;;  %2866 = vmatprep.subr.bf16.mxu1 %v3255_v15 }
  0x3c   :  { %v3619_v29 = vpack.c.bf16 %v4612_v28, %v4611_v13  ;;  %173 = vmatprep.mubr.f32.mxu0 %v172_v4  ;;  %v4615_v26 = vand.u32 4294901760, %v3367_v24  ;;  %v4616_v17 = vand.u32 4294901760, %v3381_v51  ;;  %v4617_v6 = vand.u32 4294901760, %v3385_v55 }
  0x3d   :  { %v3625_v9 = vpack.c.bf16 %v4614_v50, %v4613_v14  ;;  %v4618_v44 = vand.u32 4294901760, %v3400_v3  ;;  %v4620_v5 = vand.u32 4294901760, %v3409_v11  ;;  %v4621_v16 = vand.u32 4294901760, %v3423_v52  ;;  %179 = vmatmul.mubr.f32.vlgmr.msra.gmra.mrb[0].mxu0 %v178_v56  ;;  %411 = vmatmul.mubr.f32.vlgmr.msra.gmra.mrb[0].mxu1 %v3562_v7 }
  0x3e   :  { %v3632_v32 = vpack.c.bf16 %v4616_v17, %v4615_v26  ;;  %v4622_v4 = vand.u32 4294901760, %v3427_v0  ;;  %v4623_v28 = vand.u32 4294901760, %v3442_v59  ;;  %v4624_v50 = vand.u32 4294901760, %v3451_v45  ;;  %2836 = vmatpush3.bf16.msra.mxu0 %v2835_v57  ;;  %2868 = vmatpush3.bf16.msra.mxu1 %v3265_v21 }
  0x3f   :  { %v3638_v34 = vpack.c.bf16 %v4618_v44, %v4617_v6  ;;  %v3644_v13 = vpack.c.bf16 %v4621_v16, %v4620_v5  ;;  %v4625_v26 = vand.u32 4294901760, %v3465_v40  ;;  %v4626_v6 = vand.u32 4294901760, %v3469_v25  ;;  %2838 = vmatprep.subr.bf16.mxu0 %v2837_v27  ;;  %2870 = vmatprep.subr.bf16.mxu1 %v3269_v23 }
  0x40   :  { %v3650_v14 = vpack.c.bf16 %v4623_v28, %v4622_v4  ;;  %v4627_v44 = vand.u32 4294901760, %v3484_v36  ;;  %v4628_v56 = vand.u32 4294901760, %v3493_v39  ;;  %v2839_v16 = vpack.c.bf16 %v3299_v41, %v3286_v31  ;;  %546 = vmatprep.mubr.f32.mxu0 %v169_v47  ;;  %653 = vmatprep.mubr.f32.mxu1 %v170_v63 }
  0x41   :  { %4619 = vst [vmem:[#allocation17_spill] sm:$0xff] %v3638_v34  ;;  %v3656_v17 = vpack.c.bf16 %v4625_v26, %v4624_v50  ;;  %v3671_v4 = vpack.c.bf16 %v404_v58, %v397_v33  ;;  %v3673_v28 = vpack.c.bf16 %v292_v38, %v285_v12  ;;  %v2841_v50 = vpack.c.bf16 %v3309_v46, %v3303_v43  ;;  %v4629_v12 = vld [vmem:[#allocation8_spill] sm:$0xff] }
  0x42   :  { %v3662_v34 = vpack.c.bf16 %v4627_v44, %v4626_v6  ;;  %v3666_v5 = vpack.c.bf16 %v278_v19, %v4628_v56  ;;  %2840 = vmatpush3.bf16.msra.mxu0 %v2839_v16  ;;  %v2843_v31 = vpack.c.bf16 %v3338_v61, %v3314_v49  ;;  %v2845_v41 = vpack.c.bf16 %v3363_v18, %v3342_v2  ;;  %v944_v26 = vld [vmem:[%s4492_s3] sm:$0xff] }
  0x43   :  { %2842 = vmatprep.subr.bf16.mxu0 %v2841_v50  ;;  %2872 = vmatpush3.bf16.msra.mxu1 %v3284_v30  ;;  %v2847_v38 = vpack.c.bf16 %v3381_v51, %v3367_v24  ;;  %v2849_v43 = vpack.c.bf16 %v3400_v3, %v3385_v55  ;;  %v2851_v46 = vpack.c.bf16 %v3423_v52, %v3409_v11  ;;  %v4630_v24 = vld [vmem:[#allocation10_spill] sm:$0xff]  ;;  %v4631_v55 = vld [vmem:[#allocation5_spill] sm:$0xff]  ;;  %v4635_v52 = vld [vmem:[#allocation7_spill] sm:$0xff]  ;;  %vm937_vm0 = vcmask 58368  }
  0x44   :  { %2874 = vmatprep.subr.bf16.mxu1 %v3301_v42  ;;  %v2853_v49 = vpack.c.bf16 %v3442_v59, %v3427_v0  ;;  %v2855_v61 = vpack.c.bf16 %v3465_v40, %v3451_v45  ;;  %v2857_v2 = vpack.c.bf16 %v3484_v36, %v3469_v25  ;;  %v2859_v18 = vpack.c.bf16 %v4629_v12, %v3493_v39  ;;  %v4632_v3 = vld [vmem:[#allocation6_spill] sm:$0xff]  ;;  %v4633_v40 = vld [vmem:[#allocation12_spill] sm:$0xff]  ;;  %v4636_v0 = vld [vmem:[#allocation9_spill] sm:$0xff] }
  0x45   :  { %v2861_v51 = vpack.c.bf16 %v4630_v24, %v3511_v53  ;;  %v4634_v45 = vld [vmem:[#allocation14_spill] sm:$0xff]  ;;  %v4637_v39 = vld [vmem:[#allocation11_spill] sm:$0xff]  ;;  %v4638_v59 = vld [vmem:[#allocation16_spill] sm:$0xff]  ;;  %v3764_v6 = vand.u32 4294901760, %v944_v26  ;;  %v3199_v44 = vmov 0.0   ;;  %vm946_vm1 = vcmask 64512  }
  0x46   :  { %2844 = vmatpush3.bf16.msra.mxu0 %v2843_v31  ;;  %v2863_v11 = vpack.c.bf16 %v4634_v45, %v4633_v40  ;;  %v4639_v25 = vand.u32 4294901760, %v4638_v59  ;;  %v4640_v36 = vld [vmem:[#allocation15_spill] sm:$0xff]  ;;  %v3780_v50 = vld [vmem:[%s4493_s4 + $0x80] sm:$0xff]  ;;  %v3785_v31 = vld [vmem:[%s4493_s4 + $0x88] sm:$0xff]  ;;  %vm2332_vm2 = vcmask 254976  }
  0x47   :  { %2846 = vmatprep.subr.bf16.mxu0 %v2845_v41  ;;  %2876 = vmatpush3.bf16.msra.mxu1 %v3312_v48  ;;  %v1519_v41 = vand.u32 4294901760, %v3780_v50  ;;  %v3805_v12 = vld [vmem:[%s4493_s4 + $0x8] sm:$0xff]  ;;  %v3815_v24 = vld [vmem:[%s4493_s4 + $0x98] sm:$0xff] }
  0x48   :  { %2878 = vmatprep.subr.bf16.mxu1 %v3340_v1  ;;  %v1474_v45 = vand.u32 4294901760, %v3805_v12 }
  0x4a   :  { %2848 = vmatpush3.bf16.msra.mxu0 %v2847_v38  ;;  %v1522_v38 = vand.u32 4294901760, %v3785_v31 }
  0x4b   :  { %2850 = vmatprep.subr.bf16.mxu0 %v2849_v43  ;;  %2880 = vmatpush3.bf16.msra.mxu1 %v3365_v20  ;;  %v3790_v43 = vsub.f32 %v944_v26, %v3764_v6 }
  0x4c   :  { %2882 = vmatprep.subr.bf16.mxu1 %v3383_v54 }
  0x4e   :  { %2852 = vmatpush3.bf16.msra.mxu0 %v2851_v46 }
  0x4f   :  { %2854 = vmatprep.subr.bf16.mxu0 %v2853_v49  ;;  %2884 = vmatpush3.bf16.msra.mxu1 %v3407_v10  ;;  %v3795_v49 = vld [vmem:[%s4493_s4] sm:$0xff] }
  0x50   :  { %2886 = vmatprep.subr.bf16.mxu1 %v3425_v60  ;;  %v1471_v40 = vand.u32 4294901760, %v3795_v49 }
  0x52   :  { %2856 = vmatpush3.bf16.msra.mxu0 %v2855_v61 }
  0x53   :  { %2858 = vmatprep.subr.bf16.mxu0 %v2857_v2  ;;  %2888 = vmatpush3.bf16.msra.mxu1 %v4631_v55  ;;  %v3800_v2 = vsub.f32 %v3780_v50, %v1519_v41 }
  0x54   :  { %2890 = vmatprep.subr.bf16.mxu1 %v4632_v3 }
  0x56   :  { %2860 = vmatpush3.bf16.msra.mxu0 %v2859_v18  ;;  %v3810_v18 = vld [vmem:[%s4493_s4 + $0x90] sm:$0xff] }
  0x57   :  { %2862 = vmatprep.subr.bf16.mxu0 %v2861_v51  ;;  %2892 = vmatpush3.bf16.msra.mxu1 %v4635_v52  ;;  %v3820_v51 = vsub.f32 %v3785_v31, %v1522_v38 }
  0x58   :  { %2894 = vmatprep.subr.bf16.mxu1 %v4636_v0 }
  0x5a   :  { %2864 = vmatpush3.bf16.msra.mxu0 %v2863_v11  ;;  %v1525_v11 = vand.u32 4294901760, %v3810_v18 }
  0x5b   :  { %2898 = vmatprep.subr.bf16.mxu0 %v3589_v37  ;;  %2896 = vmatpush3.bf16.msra.mxu1 %v4637_v39 }
  0x5c   :  { %2930 = vmatprep.subr.bf16.mxu1 %v3255_v15  ;;  %v4641_v15 = vld [vmem:[#allocation17_spill] sm:$0xff] }
  0x5d   :  { %549 = vmatmul.mubr.f32.vlgmr.msra.gmra.mrb[2].mxu0 %v4638_v59  ;;  %v4558_v59 = vand.u32 4294901760, %v3800_v2 }
  0x5e   :  { %2900 = vmatpush3.bf16.msra.mxu0 %v3595_v8  ;;  %657 = vmatmul.mubr.f32.vlgmr.msra.gmra.mrb[2].mxu1 %v4639_v25 }
  0x5f   :  { %2902 = vmatprep.subr.bf16.mxu0 %v3601_v62  ;;  %2932 = vmatpush3.bf16.msra.mxu1 %v3265_v21 }
  0x60   :  { %2934 = vmatprep.subr.bf16.mxu1 %v3269_v23  ;;  %823 = vmatprep.mubr.f32.mxu0 %v4640_v36  ;;  %v2348_v23 = vld [vmem:[%s4491_s2] ss:$0 sm:$0xff] }
  0x61   :  { %927 = vmatprep.mubr.f32.mxu1 %v4640_v36  ;;  %v4556_v36 = vand.u32 4294901760, %v3820_v51 }
  0x62   :  { %2904 = vmatpush3.bf16.msra.mxu0 %v3607_v35 }
  0x63   :  { %2906 = vmatprep.subr.bf16.mxu0 %v3613_v22  ;;  %2936 = vmatpush3.bf16.msra.mxu1 %v3284_v30 }
  0x64   :  { %2938 = vmatprep.subr.bf16.mxu1 %v3301_v42 }
  0x66   :  { %2908 = vmatpush3.bf16.msra.mxu0 %v3619_v29 }
  0x67   :  { %2910 = vmatprep.subr.bf16.mxu0 %v3625_v9  ;;  %2940 = vmatpush3.bf16.msra.mxu1 %v3312_v48 }
  0x68   :  { %2942 = vmatprep.subr.bf16.mxu1 %v3340_v1 }
  0x6a   :  { %2912 = vmatpush3.bf16.msra.mxu0 %v3632_v32 }
  0x6b   :  { %2914 = vmatprep.subr.bf16.mxu0 %v4641_v15  ;;  %2944 = vmatpush3.bf16.msra.mxu1 %v3365_v20  ;;  %v3839_v15 = vld [vmem:[%s4493_s4 + $0x18] sm:$0xff] }
  0x6c   :  { %2946 = vmatprep.subr.bf16.mxu1 %v3383_v54 }
  0x6e   :  { %2916 = vmatpush3.bf16.msra.mxu0 %v3644_v13 }
  0x6f   :  { %2918 = vmatprep.subr.bf16.mxu0 %v3650_v14  ;;  %2948 = vmatpush3.bf16.msra.mxu1 %v3407_v10  ;;  %v945_v14 = vld [vmem:[%s4492_s3 + $0x8] sm:$0xff] }
  0x70   :  { %2950 = vmatprep.subr.bf16.mxu1 %v3425_v60 }
  0x72   :  { %2920 = vmatpush3.bf16.msra.mxu0 %v3656_v17  ;;  %v3762_v17 = vand.u32 4294901760, %v945_v14 }
  0x73   :  { %2922 = vmatprep.subr.bf16.mxu0 %v3662_v34  ;;  %2952 = vmatpush3.bf16.msra.mxu1 %v4631_v55 }
  0x74   :  { %2954 = vmatprep.subr.bf16.mxu1 %v4632_v3  ;;  %v3773_v56 = vsub.f32 %v945_v14, %v3762_v17  ;;  %v1036_v3 = vand.u32 4294901760, %v3790_v43 }
  0x76   :  { %2924 = vmatpush3.bf16.msra.mxu0 %v3666_v5  ;;  %v1030_v5 = vand.u32 4294901760, %v3773_v56 }
  0x77   :  { %2926 = vmatprep.subr.bf16.mxu0 %v3671_v4  ;;  %2956 = vmatpush3.bf16.msra.mxu1 %v4635_v52  ;;  %v1528_v52 = vand.u32 4294901760, %v3815_v24 }
  0x78   :  { %2958 = vmatprep.subr.bf16.mxu1 %v4636_v0  ;;  %v1031_v16 = vsub.f32 %v3773_v56, %v1030_v5  ;;  %v3830_v0 = vld [vmem:[%s4493_s4 + $0x10] sm:$0xff] }
  0x7a   :  { %2928 = vmatpush3.bf16.msra.mxu0 %v3673_v28  ;;  %v1032_v4 = vand.u32 4294901760, %v1031_v16 }
  0x7b   :  { %2960 = vmatpush3.bf16.msra.mxu1 %v4637_v39  ;;  %1188 = vmatprep.subr.mxu0 %v3762_v17 }
  0x7c   :  { %951 = vmatprep.subr.mxu1 %v3762_v17 }
  0x7d   :  { %825 = vmatmul.mubr.f32.vlgmr.msra.gmra.mrb[4].mxu0 %v3562_v7 }
  0x7e   :  { %929 = vmatmul.mubr.f32.vlgmr.msra.gmra.mrb[4].mxu1 %v3562_v7  ;;  %1253 = vmatprep.mubr.f32.mxu0 %v3199_v44 }
  0x7f   :  { %1016 = vmatprep.mubr.f32.mxu1 %v3199_v44  ;;  %1190 = vmatpush1.msra.mxu0 %v3764_v6 }
  0x80   :  { %953 = vmatpush1.msra.mxu1 %v3764_v6  ;;  %1266 = vmatprep.subr.mxu0 %v1030_v5 }
  0x81   :  { %1033 = vmatprep.subr.mxu1 %v1032_v4 }
 0x110   :  { %v2381_v21 = vpop.f32.mrb[0].mxu0  ;;  %v2416_v42 = vpop.f32.mrb[0].mxu1 }
 0x111   :  { %v2382_v30 = vpop.f32.mrb[1].mxu0  ;;  %v2417_v1 = vpop.f32.mrb[1].mxu1 }
 0x112   :  { %v2383_v48 = vadd.f32 %v2382_v30, %v2381_v21  ;;  %v2418_v20 = vadd.f32 %v2417_v1, %v2416_v42  ;;  %v1037_v21 = vsub.f32 %v3790_v43, %v1036_v3  ;;  %v1477_v30 = vand.u32 4294901760, %v3830_v0  ;;  %v3851_v42 = vld [vmem:[%s4493_s4 + $0xa0] sm:$0xff] }
 0x114   :  { %v181_v54 = vadd.f32 %v2383_v48, %v2348_v23  ;;  %v3845_v23 = vsub.f32 %v3795_v49, %v1471_v40  ;;  %v3856_v48 = vld [vmem:[%s4493_s4 + $0xa8] sm:$0xff]  ;;  %v3998_v49 = vld [vmem:[%s4493_s4 + $0xb0] sm:$0xff] }
 0x116   :  { %v413_v10 = vadd.f32 %v2418_v20, %v181_v54  ;;  %v3864_v20 = vsub.f32 %v3805_v12, %v1474_v45  ;;  %v3869_v54 = vsub.f32 %v3810_v18, %v1525_v11  ;;  %v4003_v12 = vld [vmem:[%s4493_s4 + $0xb8] sm:$0xff] }
 0x130   :  { %v2451_v60 = vpop.f32.mrb[2].mxu0 }
 0x131   :  { %v2452_v53 = vpop.f32.mrb[3].mxu0  ;;  %v2486_v57 = vpop.f32.mrb[2].mxu1 }
 0x132   :  { %v2453_v19 = vadd.f32 %v2452_v53, %v2451_v60  ;;  %v2487_v37 = vpop.f32.mrb[3].mxu1  ;;  %v1698_v60 = vsub.f32 %v3800_v2, %v4558_v59  ;;  %v1480_v53 = vand.u32 4294901760, %v3839_v15  ;;  %v4153_v59 = vld [vmem:[%s4493_s4 + $0xe0] sm:$0xff] }
 0x133   :  { %v2488_v27 = vadd.f32 %v2487_v37, %v2486_v57  ;;  %v1531_v37 = vand.u32 4294901760, %v3851_v42 }
 0x134   :  { %v551_v33 = vadd.f32 %v2453_v19, %v413_v10  ;;  %v3874_v10 = vsub.f32 %v3815_v24, %v1528_v52  ;;  %v1705_v19 = vsub.f32 %v3820_v51, %v4556_v36  ;;  %v4088_v18 = vpack.c.bf16 %v1480_v53, %v1477_v30 }
 0x135   :  { %v3918_v26 = vsub.f32 %v3851_v42, %v1531_v37 }
 0x136   :  { %v659_v7 = vadd.f32 %v2488_v27, %v551_v33  ;;  %v1534_v27 = vand.u32 4294901760, %v3856_v48  ;;  %v3889_v33 = vld [vmem:[%s4493_s4 + $0x20] sm:$0xff]  ;;  %v1706_v14 = vand.u32 4294901760, %v1705_v19 }
 0x138   :  { %v3923_v5 = vsub.f32 %v3856_v48, %v1534_v27 }
 0x150   :  { %v2521_v58 = vpop.f32.mrb[4].mxu0 }
 0x151   :  { %v2522_v62 = vpop.f32.mrb[5].mxu0  ;;  %v2556_v47 = vpop.f32.mrb[4].mxu1 }
 0x152   :  { %v2523_v63 = vadd.f32 %v2522_v62, %v2521_v58  ;;  %v2557_v8 = vpop.f32.mrb[5].mxu1  ;;  %v1038_v58 = vand.u32 4294901760, %v1037_v21  ;;  %v4555_v62 = vand.u32 4294901760, %v3845_v23  ;;  %v4545_v21 = vand.u32 4294901760, %v3918_v26 }
 0x153   :  { %v2558_v35 = vadd.f32 %v2557_v8, %v2556_v47  ;;  %v3900_v47 = vsub.f32 %v3830_v0, %v1477_v30  ;;  %v4554_v8 = vand.u32 4294901760, %v3864_v20  ;;  %v4104_v0 = vld [vmem:[%s4493_s4 + $0xd0] sm:$0xff] }
 0x154   :  { %v827_v22 = vadd.f32 %v2523_v63, %v659_v7  ;;  %v3894_v7 = vld [vmem:[%s4493_s4 + $0x28] sm:$0xff]  ;;  %v1586_v16 = vsub.f32 %v3845_v23, %v4555_v62  ;;  %v4138_v62 = vld [vmem:[%s4493_s4 + $0x58] sm:$0xff] }
 0x155   :  { %v4547_v4 = vand.u32 4294901760, %v3900_v47 }
 0x156   :  { %v931_v29 = vadd.f32 %v2558_v35, %v827_v22  ;;  %v4553_v35 = vand.u32 4294901760, %v3869_v54  ;;  %v4552_v22 = vand.u32 4294901760, %v3874_v10 }
 0x158   :  { %3166 = vtanh.f32 %v931_v29  ;;  %v1699_v29 = vand.u32 4294901760, %v1698_v60  ;;  %v4542_v60 = vand.u32 4294901760, %v3923_v5 }
 0x162   :  { %v3167_v9 = vpop.eup %3166 }
 0x163   :  { %v935_v32 = vmul.f32 1.442695, %v3167_v9  ;;  %v3910_v9 = vsub.f32 %v3839_v15, %v1480_v53 }
 0x165   :  { %3168 = vpow2.f32 %v935_v32  ;;  %v1483_v32 = vand.u32 4294901760, %v3889_v33 }
 0x16f   :  { %v3169_v34 = vpop.eup %3168 }
 0x170   :  { %v938_v13 = vsel %vm937_vm0, %v3169_v34, 0.0 }
 0x171   :  { %939 = vadd.xlane.f32.xlu0 %v938_v13 }
 0x1fe   :  { %v940_v28 = vpop.xlane.xlu0 %939 }
 0x1ff   :  { %3170 = vrcp.f32 %v940_v28  ;;  %v1712_v28 = vsub.f32 %v3869_v54, %v4553_v35 }
 0x209   :  { %v3171_v46 = vpop.eup %3170 }
 0x20a   :  { %v942_v61 = vmul.f32 %v3171_v46, %v3169_v34  ;;  %v1486_v34 = vand.u32 4294901760, %v3894_v7  ;;  %v4546_v46 = vand.u32 4294901760, %v3910_v9 }
 0x20c   :  { %v943_v55 = vadd.f32 1e-10, %v942_v61  ;;  %v3940_v61 = vsub.f32 %v3889_v33, %v1483_v32 }
 0x20e   :  { %v948_v39 = vsel %vm946_vm1, %v943_v55, 0  ;;  %v3945_v55 = vsub.f32 %v3894_v7, %v1486_v34 }
 0x20f   :  { %v3833_v25 = vand.u32 4294901760, %v948_v39 }
 0x211   :  { %v3859_v1 = vsub.f32 %v948_v39, %v3833_v25  ;;  %v1719_v39 = vsub.f32 %v3874_v10, %v4552_v22 }
 0x213   :  { %v1019_v57 = vand.u32 4294901760, %v3859_v1 }
 0x215   :  { %1257 = vmatmul.mubr.f32.vlgmr.msra.gmra.mrb[6].mxu0 %v1019_v57  ;;  %v1020_v63 = vsub.f32 %v3859_v1, %v1019_v57  ;;  %v1587_v57 = vand.u32 4294901760, %v1586_v16  ;;  %v3968_v16 = vpack.c.bf16 %v1522_v38, %v1519_v41 }
 0x216   :  { %1270 = vmatpush1.msra.mxu0 %v1036_v3  ;;  %1333 = vmatprep.mubr.f32.mxu0 %v3199_v44  ;;  %v2993_v3 = vpack.c.bf16 %v1706_v14, %v1699_v29  ;;  %v4544_v29 = vand.u32 4294901760, %v3940_v61  ;;  %v1720_v14 = vand.u32 4294901760, %v1719_v39 }
 0x217   :  { %v1021_v13 = vand.u32 4294901760, %v1020_v63  ;;  %1342 = vmatprep.subr.mxu0 %v3762_v17  ;;  %v1593_v17 = vsub.f32 %v3864_v20, %v4554_v8  ;;  %v1607_v63 = vsub.f32 %v3910_v9, %v4546_v46  ;;  %v4133_v8 = vld [vmem:[%s4493_s4 + $0x50] sm:$0xff] }
 0x218   :  { %v1614_v31 = vsub.f32 %v3940_v61, %v4544_v29  ;;  %v4071_v29 = vpack.c.bf16 %v1528_v52, %v1525_v11 }
 0x219   :  { %1022 = vmatmul.mubr.f32.vlgmr.msra.gmra.mrb[6].mxu1 %v1021_v13  ;;  %v1594_v19 = vand.u32 4294901760, %v1593_v17  ;;  %v4543_v13 = vand.u32 4294901760, %v3945_v55  ;;  %v1733_v17 = vsub.f32 %v3923_v5, %v4542_v60 }
 0x21a   :  { %1039 = vmatpush1.msra.mxu1 %v1038_v58  ;;  %1102 = vmatprep.mubr.f32.mxu1 %v3199_v44  ;;  %v1600_v58 = vsub.f32 %v3900_v47, %v4547_v4 }
 0x21b   :  { %1112 = vmatprep.subr.mxu1 %v3773_v56  ;;  %v1713_v56 = vand.u32 4294901760, %v1712_v28  ;;  %v2995_v50 = vpack.c.bf16 %v1594_v19, %v1587_v57  ;;  %v1621_v41 = vsub.f32 %v3945_v55, %v4543_v13  ;;  %v1734_v60 = vand.u32 4294901760, %v1733_v17 }
 0x21c   :  { %v1601_v28 = vand.u32 4294901760, %v1600_v58  ;;  %v1615_v57 = vand.u32 4294901760, %v1614_v31 }
 0x21d   :  { %1335 = vmatmul.mubr.f32.vlgmr.msra.gmra.mrb[6].mxu0 %v3833_v25  ;;  %v2997_v38 = vpack.c.bf16 %v1720_v14, %v1713_v56  ;;  %v1622_v19 = vand.u32 4294901760, %v1621_v41 }
 0x21e   :  { %1344 = vmatpush1.msra.mxu0 %v3764_v6  ;;  %1407 = vmatprep.mubr.f32.mxu0 %v3199_v44  ;;  %v1726_v6 = vsub.f32 %v3918_v26, %v4545_v21 }
 0x21f   :  { %2994 = vmatprep.subr.bf16.mxu0 %v2993_v3  ;;  %v1608_v3 = vand.u32 4294901760, %v1607_v63  ;;  %v3003_v56 = vpack.c.bf16 %v1622_v19, %v1615_v57  ;;  %v4061_v57 = vld [vmem:[%s4493_s4 + $0x48] sm:$0xff] }
 0x220   :  { %v1727_v39 = vand.u32 4294901760, %v1726_v6  ;;  %v4559_v13 = vand.u32 4294901760, %v4061_v57 }
 0x221   :  { %1104 = vmatmul.mubr.f32.vlgmr.msra.gmra.mrb[6].mxu1 %v3833_v25 }
 0x222   :  { %1115 = vmatpush1.msra.mxu1 %v3790_v43  ;;  %1178 = vmatprep.mubr.f32.mxu1 %v3199_v44  ;;  %v2999_v43 = vpack.c.bf16 %v1608_v3, %v1601_v28  ;;  %v3991_v44 = vpack.c.bf16 %v1474_v45, %v1471_v40  ;;  %v3001_v58 = vpack.c.bf16 %v1734_v60, %v1727_v39  ;;  %v1537_v40 = vand.u32 4294901760, %v3998_v49  ;;  %v4047_v3 = vld [vmem:[%s4493_s4 + $0xc8] sm:$0xff] }
 0x223   :  { %2962 = vmatprep.subr.bf16.mxu1 %v3968_v16  ;;  %v1540_v45 = vand.u32 4294901760, %v4003_v12  ;;  %v4565_v39 = vand.u32 4294901760, %v4047_v3  ;;  %v4118_v22 = vsub.f32 %v4061_v57, %v4559_v13 }
 0x224   :  { %v4022_v14 = vsub.f32 %v3998_v49, %v1537_v40 }
 0x225   :  { %1409 = vmatmul.mubr.f32.vlgmr.msra.gmra.mrb[6].mxu0 %v3833_v25  ;;  %v4010_v25 = vld [vmem:[%s4493_s4 + $0x30] sm:$0xff]  ;;  %v4027_v6 = vsub.f32 %v4003_v12, %v1540_v45  ;;  %v4099_v52 = vsub.f32 %v4047_v3, %v4565_v39  ;;  %4642 = vst [vmem:[#allocation8_spill] sm:$0xff] %v4118_v22 }
 0x226   :  { %2996 = vmatpush3.bf16.msra.mxu0 %v2995_v50  ;;  %v1489_v60 = vand.u32 4294901760, %v4010_v25  ;;  %v4042_v50 = vld [vmem:[%s4493_s4 + $0xc0] sm:$0xff]  ;;  %v4551_v31 = vand.u32 4294901760, %v4022_v14 }
 0x227   :  { %2998 = vmatprep.subr.bf16.mxu0 %v2997_v38  ;;  %v4550_v41 = vand.u32 4294901760, %v4027_v6  ;;  %v4566_v38 = vand.u32 4294901760, %v4042_v50 }
 0x228   :  { %v4032_v17 = vsub.f32 %v4010_v25, %v1489_v60  ;;  %v1740_v21 = vsub.f32 %v4022_v14, %v4551_v31  ;;  %v4561_v31 = vand.u32 4294901760, %v4099_v52 }
 0x229   :  { %1181 = vmatmul.mubr.f32.vlgmr.msra.gmra.mrb[6].mxu1 %v3859_v1  ;;  %v4015_v1 = vld [vmem:[%s4493_s4 + $0x38] sm:$0xff]  ;;  %v1747_v46 = vsub.f32 %v4027_v6, %v4550_v41  ;;  %v4082_v4 = vsub.f32 %v4042_v50, %v4566_v38 }
 0x22a   :  { %3000 = vmatpush3.bf16.msra.mxu0 %v2999_v43  ;;  %2964 = vmatpush3.bf16.msra.mxu1 %v3991_v44  ;;  %v4567_v63 = vand.u32 4294901760, %v4015_v1  ;;  %v4056_v43 = vld [vmem:[%s4493_s4 + $0x40] sm:$0xff]  ;;  %v4549_v19 = vand.u32 4294901760, %v4032_v17  ;;  %v1741_v15 = vand.u32 4294901760, %v1740_v21  ;;  %v4645_v49 = vand.u32 4294901760, %v4015_v1 }
 0x22b   :  { %3002 = vmatprep.subr.bf16.mxu0 %v3001_v58  ;;  %2966 = vmatprep.subr.bf16.mxu1 %v4071_v29  ;;  %v1748_v30 = vand.u32 4294901760, %v1747_v46  ;;  %v4557_v53 = vand.u32 4294901760, %v4082_v4  ;;  %v4123_v46 = vld [vmem:[%s4493_s4 + $0xd8] sm:$0xff] }
 0x22c   :  { %v4037_v28 = vsub.f32 %v4015_v1, %v4567_v63  ;;  %v1628_v24 = vsub.f32 %v4032_v17, %v4549_v19  ;;  %v1552_v48 = vand.u32 4294901760, %v4123_v46  ;;  %v4646_v1 = vand.u32 4294901760, %v4042_v50 }
 0x22d   :  { %v3005_v21 = vpack.c.bf16 %v1748_v30, %v1741_v15  ;;  %v1754_v35 = vsub.f32 %v4082_v4, %v4557_v53  ;;  %v4144_v15 = vpack.c.bf16 %v1534_v27, %v1531_v37  ;;  %v1761_v30 = vsub.f32 %v4099_v52, %v4561_v31 }
 0x22e   :  { %3004 = vmatpush3.bf16.msra.mxu0 %v3003_v56  ;;  %v4548_v58 = vand.u32 4294901760, %v4037_v28  ;;  %v4564_v56 = vand.u32 4294901760, %v4056_v43  ;;  %2968 = vmatpush3.bf16.msra.mxu1 %v4088_v18  ;;  %v1629_v19 = vand.u32 4294901760, %v1628_v24  ;;  %v4562_v53 = vand.u32 4294901760, %v4118_v22 }
 0x22f   :  { %3006 = vmatprep.subr.bf16.mxu0 %v3005_v21  ;;  %v1755_v13 = vand.u32 4294901760, %v1754_v35  ;;  %2970 = vmatprep.subr.bf16.mxu1 %v4144_v15  ;;  %v1762_v27 = vand.u32 4294901760, %v1761_v30  ;;  %v1501_v35 = vand.u32 4294901760, %v4133_v8  ;;  %v4173_v21 = vld [vmem:[%s4493_s4 + $0xe8] sm:$0xff]  ;;  %v4574_v30 = vand.u32 4294901760, %v4153_v59 }
 0x230   :  { %v1635_v11 = vsub.f32 %v4037_v28, %v4548_v58  ;;  %v4111_v58 = vsub.f32 %v4056_v43, %v4564_v56  ;;  %v4189_v56 = vpack.c.bf16 %v1486_v34, %v1483_v32 }
 0x231   :  { %v4192_v39 = vsub.f32 %v4133_v8, %v1501_v35  ;;  %v4207_v8 = vsub.f32 %v4153_v59, %v4574_v30 }
 0x232   :  { %v1636_v41 = vand.u32 4294901760, %v1635_v11  ;;  %v4560_v24 = vand.u32 4294901760, %v4111_v58  ;;  %v4563_v11 = vand.u32 4294901760, %v4104_v0  ;;  %2972 = vmatpush3.bf16.msra.mxu1 %v4189_v56 }
 0x233   :  { %v4568_v7 = vand.u32 4294901760, %v4192_v39 }
 0x234   :  { %v3007_v36 = vpack.c.bf16 %v1636_v41, %v1629_v19  ;;  %v1642_v42 = vsub.f32 %v4111_v58, %v4560_v24  ;;  %v4162_v37 = vsub.f32 %v4104_v0, %v4563_v11  ;;  %v1649_v41 = vsub.f32 %v4118_v22, %v4562_v53  ;;  %v4183_v53 = vld [vmem:[%s4493_s4 + $0x60] sm:$0xff] }
 0x235   :  { %v1504_v19 = vand.u32 4294901760, %v4138_v62  ;;  %v3009_v11 = vpack.c.bf16 %v1762_v27, %v1755_v13  ;;  %v1558_v13 = vand.u32 4294901760, %v4173_v21  ;;  %v1507_v32 = vand.u32 4294901760, %v4183_v53  ;;  %v1440_v27 = vld [vmem:[%s4493_s4 + $0x68] sm:$0xff] }
 0x236   :  { %4643 = vst [vmem:[#allocation10_spill] sm:$0xff] %v4162_v37  ;;  %3008 = vmatpush3.bf16.msra.mxu0 %v3007_v36  ;;  %v1643_v24 = vand.u32 4294901760, %v1642_v42  ;;  %v4572_v31 = vand.u32 4294901760, %v4162_v37  ;;  %v4177_v36 = vsub.f32 %v4123_v46, %v1552_v48  ;;  %v1650_v42 = vand.u32 4294901760, %v1649_v41 }
 0x237   :  { %v4199_v63 = vsub.f32 %v4138_v62, %v1504_v19  ;;  %3010 = vmatprep.subr.bf16.mxu0 %v3009_v11  ;;  %v4214_v62 = vpack.c.bf16 %v1540_v45, %v1537_v40  ;;  %v4227_v41 = vpack.c.bf16 %v4645_v49, %v1489_v60  ;;  %v1656_v12 = vsub.f32 %v4192_v39, %v4568_v7 }
 0x238   :  { %4644 = vst [vmem:[#allocation5_spill] sm:$0xff] %v4177_v36  ;;  %v1768_v46 = vsub.f32 %v4162_v37, %v4572_v31  ;;  %v4571_v38 = vand.u32 4294901760, %v4177_v36  ;;  %v3011_v33 = vpack.c.bf16 %v1650_v42, %v1643_v24  ;;  %v4569_v40 = vand.u32 4294901760, %v4207_v8 }
 0x239   :  { %v4570_v11 = vand.u32 4294901760, %v4199_v63  ;;  %v4234_v45 = vsub.f32 %v4173_v21, %v1558_v13  ;;  %2974 = vmatprep.subr.bf16.mxu1 %v4214_v62  ;;  %v4647_v60 = vand.u32 4294901760, %v4047_v3  ;;  %v4650_v49 = vand.u32 4294901760, %v4061_v57  ;;  %v1457_v21 = vld [vmem:[%s4493_s4 + $0xf0] sm:$0xff] }
 0x23a   :  { %v1769_v34 = vand.u32 4294901760, %v1768_v46  ;;  %v1775_v24 = vsub.f32 %v4177_v36, %v4571_v38  ;;  %3012 = vmatpush3.bf16.msra.mxu0 %v3011_v33  ;;  %v4649_v33 = vand.u32 4294901760, %v4056_v43  ;;  %2976 = vmatpush3.bf16.msra.mxu1 %v4227_v41  ;;  %v1782_v50 = vsub.f32 %v4207_v8, %v4569_v40  ;;  %v1458_v43 = vld [vmem:[%s4493_s4 + $0xf8] sm:$0xff]  ;;  %v1441_v40 = vld [vmem:[%s4493_s4 + $0x70] sm:$0xff] }
 0x23b   :  { %v1663_v25 = vsub.f32 %v4199_v63, %v4570_v11  ;;  %v4244_v46 = vpack.c.bf16 %v4647_v60, %v4646_v1  ;;  %v4573_v3 = vand.u32 4294901760, %v4234_v45  ;;  %v1510_v1 = vand.u32 4294901760, %v1440_v27 }
 0x23c   :  { %v1776_v42 = vand.u32 4294901760, %v1775_v24  ;;  %v4250_v7 = vpack.c.bf16 %v4650_v49, %v4649_v33  ;;  %v1657_v24 = vand.u32 4294901760, %v1656_v12  ;;  %v4265_v33 = vsub.f32 %v4183_v53, %v1507_v32  ;;  %v1442_v53 = vld [vmem:[%s4493_s4 + $0x78] sm:$0xff] }
 0x23d   :  { %4648 = vst [vmem:[#allocation6_spill] sm:$0xff] %v4244_v46  ;;  %v1664_v60 = vand.u32 4294901760, %v1663_v25  ;;  %2978 = vmatprep.subr.bf16.mxu1 %v4244_v46  ;;  %v4652_v12 = vand.u32 4294901760, %v4104_v0  ;;  %v1783_v11 = vand.u32 4294901760, %v1782_v50  ;;  %v1789_v38 = vsub.f32 %v4234_v45, %v4573_v3 }
 0x23e   :  { %4651 = vst [vmem:[#allocation12_spill] sm:$0xff] %v4250_v7  ;;  %v3013_v57 = vpack.c.bf16 %v1776_v42, %v1769_v34  ;;  %v4277_v34 = vsub.f32 %v1440_v27, %v1510_v1  ;;  %v1561_v42 = vand.u32 4294901760, %v1457_v21  ;;  %v1564_v25 = vand.u32 4294901760, %v1458_v43  ;;  %2980 = vmatpush3.bf16.msra.mxu1 %v4250_v7 }
 0x23f   :  { %v4269_v49 = vpack.c.bf16 %v1552_v48, %v4652_v12  ;;  %v3015_v0 = vpack.c.bf16 %v1664_v60, %v1657_v24  ;;  %v4577_v48 = vand.u32 4294901760, %v4265_v33  ;;  %v4283_v12 = vpack.c.bf16 %v1504_v19, %v1501_v35 }
 0x240   :  { %3014 = vmatprep.subr.bf16.mxu0 %v3013_v57  ;;  %v1790_v31 = vand.u32 4294901760, %v1789_v38  ;;  %v4580_v50 = vand.u32 4294901760, %v4277_v34  ;;  %v4287_v3 = vsub.f32 %v1457_v21, %v1561_v42  ;;  %v1513_v27 = vand.u32 4294901760, %v1441_v40 }
 0x241   :  { %4653 = vst [vmem:[#allocation14_spill] sm:$0xff] %v4269_v49  ;;  %4654 = vst [vmem:[#allocation7_spill] sm:$0xff] %v4283_v12  ;;  %3016 = vmatpush3.bf16.msra.mxu0 %v3015_v0  ;;  %v1670_v30 = vsub.f32 %v4265_v33, %v4577_v48  ;;  %2982 = vmatprep.subr.bf16.mxu1 %v4269_v49  ;;  %v4293_v24 = vsub.f32 %v1458_v43, %v1564_v25  ;;  %v1516_v57 = vand.u32 4294901760, %v1442_v53 }
 0x242   :  { %v4655_v35 = vand.u32 4294901760, %v4153_v59  ;;  %v3017_v19 = vpack.c.bf16 %v1790_v31, %v1783_v11  ;;  %v1677_v21 = vsub.f32 %v4277_v34, %v4580_v50  ;;  %v1795_v60 = vand.u32 4294901760, %v4287_v3  ;;  %2984 = vmatpush3.bf16.msra.mxu1 %v4283_v12 }
 0x243   :  { %v4303_v0 = vsub.f32 %v1441_v40, %v1513_v27  ;;  %v1671_v7 = vand.u32 4294901760, %v1670_v30  ;;  %v1802_v48 = vand.u32 4294901760, %v4293_v24  ;;  %v4306_v49 = vsub.f32 %v1442_v53, %v1516_v57 }
 0x244   :  { %v4297_v38 = vpack.c.bf16 %v1558_v13, %v4655_v35  ;;  %3018 = vmatprep.subr.bf16.mxu0 %v3017_v19  ;;  %v1678_v43 = vand.u32 4294901760, %v1677_v21  ;;  %v1796_v59 = vsub.f32 %v4287_v3, %v1795_v60  ;;  %v4311_v13 = vpack.c.bf16 %v1510_v1, %v1507_v32 }
 0x245   :  { %v1683_v31 = vand.u32 4294901760, %v4303_v0  ;;  %v1803_v11 = vsub.f32 %v4293_v24, %v1802_v48  ;;  %v1690_v40 = vand.u32 4294901760, %v4306_v49  ;;  %v4316_v30 = vpack.c.bf16 %v1564_v25, %v1561_v42 }
 0x246   :  { %2986 = vmatprep.subr.bf16.mxu1 %v4297_v38  ;;  %v3019_v53 = vpack.c.bf16 %v1678_v43, %v1671_v7  ;;  %v1797_v35 = vand.u32 4294901760, %v1796_v59  ;;  %v4321_v32 = vpack.c.bf16 %v1516_v57, %v1513_v27  ;;  %v3025_v42 = vpack.c.bf16 %v3820_v51, %v3800_v2 }
 0x247   :  { %v1684_v19 = vsub.f32 %v4303_v0, %v1683_v31  ;;  %v1804_v21 = vand.u32 4294901760, %v1803_v11  ;;  %v1691_v50 = vsub.f32 %v4306_v49, %v1690_v40  ;;  %2988 = vmatpush3.bf16.msra.mxu1 %v4311_v13  ;;  %v3037_v25 = vpack.c.bf16 %v4027_v6, %v4022_v14  ;;  %v3172_v11 = vld [vmem:[%s4489_s0] sm:$0xf]  ;;  %s3200_s0 = smov [#allocation2]  }
 0x248   :  { %3020 = vmatpush3.bf16.msra.mxu0 %v3019_v53  ;;  %2990 = vmatprep.subr.bf16.mxu1 %v4316_v30  ;;  %v3039_v27 = vpack.c.bf16 %v4037_v28, %v4032_v17  ;;  %v3043_v57 = vpack.c.bf16 %v4118_v22, %v4111_v58  ;;  %s2340_s21 = sshll.u32 %s3200_s0, 4  ;;  %s2341_s21 = int_to_ptr.vmem [resolvable:$true] %s2340_s21 }
 0x249   :  { %v1685_v12 = vand.u32 4294901760, %v1684_v19  ;;  %v3021_v1 = vpack.c.bf16 %v1804_v21, %v1797_v35  ;;  %v1692_v46 = vand.u32 4294901760, %v1691_v50  ;;  %v3041_v50 = vpack.c.bf16 %v4099_v52, %v4082_v4  ;;  %s3174_s22 = scalar_lea.vmem %s2341_s21, 32  ;;  %p3179_p1 = scmp.lt.s32.totalorder %s2341_s21, %s2341_s21 }
 0x24a   :  { %v4348_v35 = vpack.c.bf16 %v1802_v48, %v1795_v60  ;;  %v4350_v19 = vpack.c.bf16 %v1690_v40, %v1683_v31  ;;  %p3175_p0 = scmp.ne.s32.totalorder %s2341_s21, %s3174_s22  ;;  %p3180_p2 = scmp.lt.s32.totalorder %s3174_s22, %s3174_s22 }
 0x24b   :  { %3022 = vmatprep.subr.bf16.mxu0 %v3021_v1  ;;  %v3023_v7 = vpack.c.bf16 %v1692_v46, %v1685_v12  ;;  %2992 = vmatpush3.bf16.msra.mxu1 %v4321_v32  ;;  %v3045_v46 = vpack.c.bf16 %v4177_v36, %v4162_v37  ;;  %v4656_v37 = vld [vmem:[#allocation13_spill] sm:$0xff] }
 0x24c   :  { %3026 = vmatprep.subr.bf16.mxu1 %v3025_v42  ;;  %p3181_p3 = por %p3180_p2, %p3179_p1 }
 0x24d   :  { %3024 = vmatpush3.bf16.msra.mxu0 %v3023_v7 }
 0x24e   :  { %3058 = vmatprep.subr.bf16.mxu0 %v3968_v16  ;;  %p3182_p4 = pnand %p3181_p3, %p3175_p0 }
 0x2f8   :  { %v1410_v21 = vpop.f32.mrb[6].mxu0 }
 0x2f9   :  { %v1412_v1 = vpop.f32.mrb[7].mxu0 }
 0x2fc   :  { %v1182_v42 = vpop.f32.mrb[6].mxu1 }
 0x2fd   :  { %v3153_v7 = vadd.f32 %v1410_v21, %v1182_v42  ;;  %v1184_v12 = vpop.f32.mrb[7].mxu1 }
 0x2fe   :  { %v3154_v36 = vadd.f32 %v1412_v1, %v1184_v12  ;;  %v3033_v1 = vpack.c.bf16 %v3923_v5, %v3918_v26 }
 0x300   :  { %v1417_v43 = vcombine.low %v3153_v7, %v3154_v36  ;;  %v3035_v7 = vpack.c.bf16 %v3945_v55, %v3940_v61 }
 0x302   :  { %v1424_v22 = vrot.slane %v1417_v43, %v4656_v37  ;;  %v3027_v43 = vpack.c.bf16 %v3864_v20, %v3845_v23 }
 0x304   :  { %v1426_v59 = vmul.f32 %v3172_v11, %v1424_v22  ;;  %v3029_v11 = vpack.c.bf16 %v3874_v10, %v3869_v54 }
 0x306   :  { %v1466_v53 = vrot.slane %v1426_v59, %v4656_v37 }
 0x308   :  { %v1467_v48 = vcombine.high %v1466_v53, %v1466_v53  ;;  %v4357_v60 = vand.u32 4294901760, %v1466_v53 }
 0x30a   :  { %v1566_v31 = vand.u32 4294901760, %v1467_v48  ;;  %v1573_v40 = vsub.f32 %v1466_v53, %v4357_v60  ;;  %v3031_v53 = vpack.c.bf16 %v3910_v9, %v3900_v47 }
 0x30c   :  { %1807 = vmatprep.mubr.f32.mxu0 %v1566_v31  ;;  %v1567_v21 = vsub.f32 %v1467_v48, %v1566_v31  ;;  %v1574_v42 = vand.u32 4294901760, %v1573_v40  ;;  %v4657_v48 = vld [vmem:[#allocation6_spill] sm:$0xff] }
 0x30d   :  { %1809 = vmatmul.mubr.f32.vlgmr.msra.gmra.mrb[8].mxu0 %v4357_v60 }
 0x30e   :  { %3060 = vmatpush3.bf16.msra.mxu0 %v3991_v44  ;;  %v1568_v36 = vand.u32 4294901760, %v1567_v21  ;;  %v1575_v12 = vsub.f32 %v1573_v40, %v1574_v42 }
 0x30f   :  { %3062 = vmatprep.subr.bf16.mxu0 %v4071_v29 }
 0x310   :  { %2051 = vmatprep.mubr.f32.mxu0 %v1568_v36  ;;  %v1569_v22 = vsub.f32 %v1567_v21, %v1568_v36  ;;  %v1576_v59 = vand.u32 4294901760, %v1575_v12  ;;  %v4658_v36 = vld [vmem:[#allocation12_spill] sm:$0xff]  ;;  %v4660_v12 = vld [vmem:[#allocation7_spill] sm:$0xff] }
 0x312   :  { %3064 = vmatpush3.bf16.msra.mxu0 %v4088_v18  ;;  %v1570_v37 = vand.u32 4294901760, %v1569_v22  ;;  %v4661_v22 = vpack.c.bf16 %v4199_v63, %v4192_v39 }
 0x313   :  { %3066 = vmatprep.subr.bf16.mxu0 %v4144_v15 }
 0x314   :  { %1571 = vmatprep.mubr.f32.mxu1 %v1570_v37 }
 0x315   :  { %1577 = vmatmul.mubr.f32.vlgmr.msra.gmra.mrb[8].mxu1 %v1576_v59 }
 0x316   :  { %3028 = vmatpush3.bf16.msra.mxu1 %v3027_v43  ;;  %3068 = vmatpush3.bf16.msra.mxu0 %v4189_v56 }
 0x317   :  { %1944 = vmatprep.mubr.f32.mxu1 %v1567_v21  ;;  %3030 = vmatprep.subr.bf16.mxu1 %v3029_v11  ;;  %v4659_v21 = vld [vmem:[#allocation14_spill] sm:$0xff] }
 0x318   :  { %3070 = vmatprep.subr.bf16.mxu0 %v4214_v62 }
 0x31a   :  { %3032 = vmatpush3.bf16.msra.mxu1 %v3031_v53  ;;  %3072 = vmatpush3.bf16.msra.mxu0 %v4227_v41 }
 0x31b   :  { %3034 = vmatprep.subr.bf16.mxu1 %v3033_v1  ;;  %3074 = vmatprep.subr.bf16.mxu0 %v4657_v48  ;;  %v4694_v1 = vand.u32 4294901760, %v4234_v45 }
 0x31e   :  { %3036 = vmatpush3.bf16.msra.mxu1 %v3035_v7  ;;  %3076 = vmatpush3.bf16.msra.mxu0 %v4658_v36 }
 0x31f   :  { %3038 = vmatprep.subr.bf16.mxu1 %v3037_v25  ;;  %3078 = vmatprep.subr.bf16.mxu0 %v4659_v21  ;;  %v4662_v25 = vpack.c.bf16 %v4234_v45, %v4207_v8 }
 0x322   :  { %3040 = vmatpush3.bf16.msra.mxu1 %v3039_v27  ;;  %3080 = vmatpush3.bf16.msra.mxu0 %v4660_v12  ;;  %v4663_v27 = vpack.c.bf16 %v4277_v34, %v4265_v33 }
 0x323   :  { %3042 = vmatprep.subr.bf16.mxu1 %v3041_v50  ;;  %3082 = vmatprep.subr.bf16.mxu0 %v4297_v38  ;;  %v4664_v50 = vpack.c.bf16 %v4293_v24, %v4287_v3 }
 0x326   :  { %3044 = vmatpush3.bf16.msra.mxu1 %v3043_v57  ;;  %3084 = vmatpush3.bf16.msra.mxu0 %v4311_v13  ;;  %v4665_v57 = vand.u32 4294901760, %v3800_v2  ;;  %v4670_v2 = vand.u32 4294901760, %v3869_v54  ;;  %v4676_v54 = vand.u32 4294901760, %v3940_v61  ;;  %v4682_v61 = vand.u32 4294901760, %v4082_v4 }
 0x327   :  { %3046 = vmatprep.subr.bf16.mxu1 %v3045_v46  ;;  %3086 = vmatprep.subr.bf16.mxu0 %v4316_v30  ;;  %v4666_v46 = vand.u32 4294901760, %v3820_v51  ;;  %v4671_v51 = vand.u32 4294901760, %v3874_v10  ;;  %v4677_v10 = vand.u32 4294901760, %v3945_v55  ;;  %v4683_v55 = vand.u32 4294901760, %v4099_v52 }
 0x328   :  { %v4691_v4 = vand.u32 4294901760, %v4192_v39  ;;  %v4692_v52 = vand.u32 4294901760, %v4199_v63 }
 0x329   :  { %v3089_v37 = vpack.c.bf16 %v4666_v46, %v4665_v57  ;;  %v3093_v3 = vpack.c.bf16 %v4671_v51, %v4670_v2  ;;  %v3099_v24 = vpack.c.bf16 %v4677_v10, %v4676_v54 }
 0x32a   :  { %3048 = vmatpush3.bf16.msra.mxu1 %v4661_v22  ;;  %3088 = vmatpush3.bf16.msra.mxu0 %v4321_v32  ;;  %v3111_v53 = vpack.c.bf16 %v4692_v52, %v4691_v4 }
 0x32b   :  { %3050 = vmatprep.subr.bf16.mxu1 %v4662_v25  ;;  %3122 = vmatprep.subr.bf16.mxu0 %v3968_v16  ;;  %v4667_v16 = vpack.c.bf16 %v4306_v49, %v4303_v0 }
 0x32d   :  { %2055 = vmatmul.mubr.f32.vlgmr.msra.gmra.mrb[10].mxu0 %v1574_v42  ;;  %v4669_v42 = vand.u32 4294901760, %v3864_v20  ;;  %v4675_v20 = vand.u32 4294901760, %v3923_v5  ;;  %v4681_v5 = vand.u32 4294901760, %v4037_v28 }
 0x32e   :  { %3052 = vmatpush3.bf16.msra.mxu1 %v4663_v27  ;;  %3124 = vmatpush3.bf16.msra.mxu0 %v3991_v44  ;;  %v4668_v44 = vand.u32 4294901760, %v3845_v23  ;;  %v4674_v23 = vand.u32 4294901760, %v3918_v26  ;;  %v4680_v26 = vand.u32 4294901760, %v4032_v17  ;;  %v4687_v17 = vld [vmem:[#allocation10_spill] sm:$0xff] }
 0x32f   :  { %2325 = vmatprep.mubr.f32.mxu0 %v1566_v31  ;;  %3054 = vmatprep.subr.bf16.mxu1 %v4664_v50  ;;  %v4688_v28 = vand.u32 4294901760, %v4687_v17 }
 0x330   :  { %3126 = vmatprep.subr.bf16.mxu0 %v4071_v29  ;;  %v3091_v43 = vpack.c.bf16 %v4669_v42, %v4668_v44  ;;  %v4672_v29 = vand.u32 4294901760, %v3900_v47  ;;  %v4678_v47 = vand.u32 4294901760, %v4022_v14  ;;  %v4684_v14 = vand.u32 4294901760, %v4111_v58 }
 0x331   :  { %v4693_v58 = vand.u32 4294901760, %v4207_v8 }
 0x332   :  { %3056 = vmatpush3.bf16.msra.mxu1 %v4667_v16  ;;  %3128 = vmatpush3.bf16.msra.mxu0 %v4088_v18  ;;  %v4673_v18 = vand.u32 4294901760, %v3910_v9  ;;  %v4679_v9 = vand.u32 4294901760, %v4027_v6  ;;  %v4685_v6 = vld [vmem:[#allocation8_spill] sm:$0xff] }
 0x333   :  { %3090 = vmatprep.subr.bf16.mxu1 %v3089_v37  ;;  %3130 = vmatprep.subr.bf16.mxu0 %v4144_v15  ;;  %v3097_v15 = vpack.c.bf16 %v4675_v20, %v4674_v23  ;;  %v4686_v0 = vand.u32 4294901760, %v4685_v6  ;;  %v3113_v7 = vpack.c.bf16 %v4694_v1, %v4693_v58 }
 0x334   :  { %v3095_v49 = vpack.c.bf16 %v4673_v18, %v4672_v29 }
 0x335   :  { %1947 = vmatmul.mubr.f32.vlgmr.msra.gmra.mrb[10].mxu1 %v1573_v40  ;;  %v4689_v40 = vld [vmem:[#allocation5_spill] sm:$0xff] }
 0x336   :  { %3092 = vmatpush3.bf16.msra.mxu1 %v3091_v43  ;;  %2221 = vmatprep.mubr.f32.mxu1 %v1566_v31  ;;  %v3107_v31 = vpack.c.bf16 %v4686_v0, %v4684_v14  ;;  %v4690_v59 = vand.u32 4294901760, %v4689_v40 }
 0x337   :  { %3132 = vmatpush3.bf16.msra.mxu0 %v4189_v56  ;;  %3094 = vmatprep.subr.bf16.mxu1 %v3093_v3  ;;  %v3101_v56 = vpack.c.bf16 %v4679_v9, %v4678_v47 }
 0x338   :  { %3134 = vmatprep.subr.bf16.mxu0 %v4214_v62  ;;  %v3103_v62 = vpack.c.bf16 %v4681_v5, %v4680_v26  ;;  %v3109_v11 = vpack.c.bf16 %v4690_v59, %v4688_v28 }
 0x33a   :  { %3096 = vmatpush3.bf16.msra.mxu1 %v3095_v49 }
 0x33b   :  { %3136 = vmatpush3.bf16.msra.mxu0 %v4227_v41  ;;  %3098 = vmatprep.subr.bf16.mxu1 %v3097_v15  ;;  %v3105_v41 = vpack.c.bf16 %v4683_v55, %v4682_v61 }
 0x33c   :  { %3138 = vmatprep.subr.bf16.mxu0 %v4657_v48  ;;  %v4695_v48 = vand.u32 4294901760, %v4265_v33 }
 0x33e   :  { %3100 = vmatpush3.bf16.msra.mxu1 %v3099_v24 }
 0x33f   :  { %3140 = vmatpush3.bf16.msra.mxu0 %v4658_v36  ;;  %3102 = vmatprep.subr.bf16.mxu1 %v3101_v56 }
 0x340   :  { %3142 = vmatprep.subr.bf16.mxu0 %v4659_v21 }
 0x342   :  { %3104 = vmatpush3.bf16.msra.mxu1 %v3103_v62 }
 0x343   :  { %3144 = vmatpush3.bf16.msra.mxu0 %v4660_v12  ;;  %3106 = vmatprep.subr.bf16.mxu1 %v3105_v41 }
 0x344   :  { %3146 = vmatprep.subr.bf16.mxu0 %v4297_v38  ;;  %v4696_v38 = vand.u32 4294901760, %v4277_v34 }
 0x346   :  { %3108 = vmatpush3.bf16.msra.mxu1 %v3107_v31  ;;  %v3115_v36 = vpack.c.bf16 %v4696_v38, %v4695_v48 }
 0x347   :  { %3148 = vmatpush3.bf16.msra.mxu0 %v4311_v13  ;;  %3110 = vmatprep.subr.bf16.mxu1 %v3109_v11 }
 0x348   :  { %3150 = vmatprep.subr.bf16.mxu0 %v4316_v30 }
 0x34a   :  { %3112 = vmatpush3.bf16.msra.mxu1 %v3111_v53 }
 0x34b   :  { %3152 = vmatpush3.bf16.msra.mxu0 %v4321_v32  ;;  %3114 = vmatprep.subr.bf16.mxu1 %v3113_v7 }
 0x34e   :  { %2327 = vmatmul.mubr.f32.vlgmr.msra.gmra.mrb[12].mxu0 %v4357_v60  ;;  %3116 = vmatpush3.bf16.msra.mxu1 %v3115_v36 }
 0x34f   :  { %3118 = vmatprep.subr.bf16.mxu1 %v4348_v35 }
 0x352   :  { %3120 = vmatpush3.bf16.msra.mxu1 %v4350_v19 }
 0x355   :  { %2223 = vmatmul.mubr.f32.vlgmr.msra.gmra.mrb[12].mxu1 %v4357_v60 }
 0x3e0   :  { %v2626_v63 = vpop.f32.mrb[8].mxu0 }
 0x3e1   :  { %v2627_v39 = vpop.f32.mrb[9].mxu0 }
 0x3e2   :  { %v2628_v8 = vadd.f32 %v2627_v39, %v2626_v63 }
 0x3e8   :  { %v2591_v45 = vpop.f32.mrb[8].mxu1 }
 0x3e9   :  { %v2592_v33 = vpop.f32.mrb[9].mxu1 }
 0x3ea   :  { %v2593_v13 = vadd.f32 %v2592_v33, %v2591_v45 }
 0x3ec   :  { %v1811_v34 = vadd.f32 %v2628_v8, %v2593_v13 }
 0x400   :  { %v2696_v30 = vpop.f32.mrb[10].mxu0 }
 0x401   :  { %v2697_v21 = vpop.f32.mrb[11].mxu0 }
 0x402   :  { %v2698_v32 = vadd.f32 %v2697_v21, %v2696_v30 }
 0x408   :  { %v2661_v12 = vpop.f32.mrb[10].mxu1 }
 0x409   :  { %v2662_v22 = vpop.f32.mrb[11].mxu1 }
 0x40a   :  { %v2663_v25 = vadd.f32 %v2662_v22, %v2661_v12 }
 0x40c   :  { %v1949_v27 = vadd.f32 %v2663_v25, %v1811_v34 }
 0x40e   :  { %v2057_v50 = vadd.f32 %v2698_v32, %v1949_v27 }
 0x421   :  { %v2766_v35 = vpop.f32.mrb[12].mxu0 }
 0x422   :  { %v2767_v57 = vpop.f32.mrb[13].mxu0 }
 0x423   :  { %v2768_v19 = vadd.f32 %v2767_v57, %v2766_v35 }
 0x428   :  { %v2731_v46 = vpop.f32.mrb[12].mxu1 }
 0x429   :  { %v2732_v60 = vpop.f32.mrb[13].mxu1 }
 0x42a   :  { %v2733_v37 = vadd.f32 %v2732_v60, %v2731_v46 }
 0x42c   :  { %v2225_v16 = vadd.f32 %v2733_v37, %v2057_v50 }
 0x42e   :  { %v2329_v44 = vadd.f32 %v2768_v19, %v2225_v16 }
 0x430   :  { %2333 = vst.msk [vmem:[#allocation2] sm:$0x3] %vm2332_vm2, %v2329_v44 }
 0x431   :  { %3185 = shalt.err (!%p3182_p4)
}
 0x432   :  { %s3186_s25 = scalar_lea.hbm %s4494_s5, 32 }
 0x433   :  { %p3187_p5 = scmp.ne.s32.totalorder %s4494_s5, %s3186_s25  ;;  %p3190_p6 = scmp.lt.u32.totalorder %s3186_s25, %s4494_s5 }
 0x435   :  { %p3192_p7 = pnand %p3190_p6, %p3187_p5 }
 0x437   :  { %3195 = shalt.err (!%p3192_p7)
}
 0x438   :  { %2343 = dma.vmem_to_hbm [thread:$0]  %s2341_s21, 32, %s4494_s5, [#allocation3]  }
 0x439   :  { %3196 = dma.done.wait [#allocation3], 32  }
 0x43a   :  { %3197 = vsyncadd [#allocation3], 4294967264 }
 0x43b   :  { %2347 = vsyncpa [#allocation3], 1 }

</bundles_post_ra>
